<compile_context>
chip_gen: v7x
topology: tpu7x:2x2x1
jax: 0.10.0
libtpu: 0.0.40
codegen_flags: <defaults>
</compile_context>

<pallas_src>
import functools

import jax
import jax.numpy as jnp
from jax.experimental import pallas as pl
from jax.experimental.pallas import tpu as pltpu


MUL = 4
BN_EPS = 1e-5


# ----------------------------------------------------------------------------
# Helpers
# ----------------------------------------------------------------------------
def _pick_row_tile(ho, wo, target_rows=512):
    """Largest divisor `th` of ho with th*wo <= target_rows.

    Prefers >=2 blocks along H when that does not shrink the tile too much
    (v7x dual-TC sharding + smaller in-kernel f32 accumulators)."""
    divisors = [d for d in range(1, ho + 1) if ho % d == 0]
    fitting = [d for d in divisors if d * wo <= target_rows]
    if not fitting:
        return 1
    best = max(fitting)
    multi = [d for d in fitting if d < ho]
    if multi and max(multi) * 2 >= best:
        return max(multi)
    return best


def _vmem_limit(est_bytes):
    """Raise the scoped-VMEM limit only when needed; cap at chip capacity."""
    if est_bytes <= 30 * 1024 * 1024:
        return None
    try:
        cap = pltpu.get_tpu_info().vmem_capacity_bytes
    except Exception:  # pragma: no cover - conservative (v7x) fallback
        cap = 64 * 1024 * 1024
    return int(min(max(est_bytes, 32 * 1024 * 1024), cap - 8 * 1024 * 1024))


# ----------------------------------------------------------------------------
# Pallas kernels
# ----------------------------------------------------------------------------
def _fused_conv1_shortcut_kernel(x_ref, w_ref, s_ref, b_ref, o1_ref, osc_ref,
                                 *, stride, csc):
    # x_ref: (th, W, Cin) f32 — strided H rows already selected by the BlockSpec.
    th, w_in, cin = x_ref.shape
    wo = w_in // stride
    x = x_ref[...]
    if stride > 1:
        # W-stride pick in VMEM (split W -> (wo, stride), keep index 0).
        # TODO(synk): fold the W stride into the DMA (strided manual copy) to
        # halve the HBM read of x on downsample blocks.
        x = x.reshape(th, wo, stride, cin)[:, :, 0, :]
    xm = x.reshape(th * wo, cin).astype(jnp.bfloat16)

    # ONE MXU matmul over [w_sc | w1] concatenated along Cout (shared LHS push,
    # better MXU N fill); BN applied on the concatenated result, then split.
    y = jnp.dot(xm, w_ref[...], preferred_element_type=jnp.float32)
    y = y * s_ref[...] + b_ref[...]
    ysc = y[:, :csc]                           # shortcut projection (no ReLU)
    y1 = jnp.maximum(y[:, csc:], 0.0)          # conv1 + ReLU
    osc_ref[...] = ysc.reshape(th, wo, csc).astype(osc_ref.dtype)
    o1_ref[...] = y1.reshape(th, wo, y1.shape[-1]).astype(o1_ref.dtype)


def _conv1x1_bn_relu_kernel(x_ref, w_ref, s_ref, b_ref, o_ref):
    # Identity-shortcut blocks only (stride is necessarily 1 there).
    th, wo, cin = x_ref.shape
    xm = x_ref[...].reshape(th * wo, cin).astype(jnp.bfloat16)
    y = jnp.dot(xm, w_ref[...], preferred_element_type=jnp.float32)
    y = jnp.maximum(y * s_ref[...] + b_ref[...], 0.0)
    o_ref[...] = y.reshape(th, wo, y.shape[-1]).astype(o_ref.dtype)


def _conv3x3_conv1x1_residual_kernel(x_ref, top_ref, bot_ref,
                                     w2_ref, s2_ref, b2_ref,
                                     w3_ref, s3_ref, b3_ref,
                                     sc_ref, o_ref):
    # Fused: conv2 (3x3, pad 1) + BN + ReLU  ->  conv3 (1x1) + BN + add + ReLU.
    th, wo, cin = x_ref.shape
    cmid = w2_ref.shape[-1]
    cexp = o_ref.shape[-1]
    i = pl.program_id(1)
    nh = pl.num_programs(1)

    # H halo rows come from the neighbouring tiles via clamped BlockSpec index
    # maps; zero them at the image boundary (multiply by 0/1 scalar mask).
    top = top_ref[...]
    bot = bot_ref[...]
    top = top * (i > 0).astype(top.dtype)
    bot = bot * (i < nh - 1).astype(bot.dtype)
    xh = jnp.concatenate([top, x_ref[...], bot], axis=0)      # (th+2, wo, cin)

    # Three W-shifted slabs (zero-padded borders) built once; per-tap slices
    # below are leading-dim row windows only — no W-crossing copy per tap.
    # TODO(synk): move the +/-1 W shift to pltpu.roll + iota mask (XLU slot).
    zcol = jnp.zeros((th + 2, 1, cin), xh.dtype)
    xs = (jnp.concatenate([zcol, xh[:, :wo - 1, :]], axis=1),  # kw = 0
          xh,                                                  # kw = 1
          jnp.concatenate([xh[:, 1:, :], zcol], axis=1))       # kw = 2

    acc = jnp.zeros((th * wo, cmid), jnp.float32)
    for kh in range(3):                                        # 9 MXU matmuls
        for kw in range(3):
            patch = xs[kw][kh:kh + th].reshape(th * wo, cin)
            acc = acc + jnp.dot(patch, w2_ref[kh, kw],
                                preferred_element_type=jnp.float32)
    z = jnp.maximum(acc * s2_ref[...] + b2_ref[...], 0.0).astype(jnp.bfloat16)

    # conv3 (1x1) + BN + residual add + ReLU — out2 never round-trips HBM.
    y = jnp.dot(z, w3_ref[...], preferred_element_type=jnp.float32)
    y = y * s3_ref[...] + b3_ref[...]
    y = y + sc_ref[...].reshape(th * wo, cexp).astype(jnp.float32)
    o_ref[...] = jnp.maximum(y, 0.0).reshape(th, wo, cexp).astype(o_ref.dtype)


# ----------------------------------------------------------------------------
# pallas_call wrappers
# ----------------------------------------------------------------------------
def fused_conv1_shortcut(x_nhwc, w1, s1, b1, wsc, ssc, bsc, *, stride):
    """conv1(1x1,stride)+BN+ReLU and shortcut(1x1,stride)+BN, one kernel/matmul."""
    N, H, W, cin = x_nhwc.shape
    ho, wo = H // stride, W // stride
    c1, csc = w1.shape[1], wsc.shape[1]

    # [shortcut | conv1] concatenated along Cout -> one wide MXU matmul in-kernel.
    wcat = jnp.concatenate([wsc, w1], axis=1)
    scat = jnp.concatenate([ssc, s1], axis=1)
    bcat = jnp.concatenate([bsc, b1], axis=1)

    th = _pick_row_tile(ho, wo, target_rows=2048)
    grid = (N, ho // th)
    kern = functools.partial(_fused_conv1_shortcut_kernel, stride=stride, csc=csc)

    if stride > 1:
        # Fold the H stride into the BlockSpec: free view splitting H->(ho, s),
        # size-1 block on the stride dim picks index 0, so only needed rows DMA.
        x_in = x_nhwc.reshape(N, ho, stride, W, cin)
        x_spec = pl.BlockSpec((None, th, None, W, cin),
                              lambda n, i: (n, i, 0, 0, 0))
    else:
        x_in = x_nhwc
        x_spec = pl.BlockSpec((None, th, W, cin), lambda n, i: (n, i, 0, 0))

    est = 3 * (2 * (th * W * cin * 4 + th * wo * (c1 + csc) * 2)
               + cin * (c1 + csc) * 2)
    out1, outsc = pl.pallas_call(
        kern,
        out_shape=(jax.ShapeDtypeStruct((N, ho, wo, c1), jnp.bfloat16),
                   jax.ShapeDtypeStruct((N, ho, wo, csc), jnp.bfloat16)),
        grid=grid,
        in_specs=[
            x_spec,
            pl.BlockSpec((cin, csc + c1), lambda n, i: (0, 0)),
            pl.BlockSpec((1, csc + c1), lambda n, i: (0, 0)),
            pl.BlockSpec((1, csc + c1), lambda n, i: (0, 0)),
        ],
        out_specs=(pl.BlockSpec((None, th, wo, c1), lambda n, i: (n, i, 0, 0)),
                   pl.BlockSpec((None, th, wo, csc), lambda n, i: (n, i, 0, 0))),
        compiler_params=pltpu.CompilerParams(
            dimension_semantics=("parallel", "parallel"),
            vmem_limit_bytes=_vmem_limit(est)),
    )(x_in, wcat, scat, bcat)
    return out1, outsc


def conv1x1_bn_relu(x_nhwc, w, s, b):
    """conv1(1x1, stride 1)+BN+ReLU (identity-shortcut blocks)."""
    N, H, W, cin = x_nhwc.shape
    cout = w.shape[1]
    th = _pick_row_tile(H, W, target_rows=2048)
    grid = (N, H // th)

    est = 3 * (2 * (th * W * cin * 4 + th * W * cout * 2) + cin * cout * 2)
    return pl.pallas_call(
        _conv1x1_bn_relu_kernel,
        out_shape=jax.ShapeDtypeStruct((N, H, W, cout), jnp.bfloat16),
        grid=grid,
        in_specs=[
            pl.BlockSpec((None, th, W, cin), lambda n, i: (n, i, 0, 0)),
            pl.BlockSpec((cin, cout), lambda n, i: (0, 0)),
            pl.BlockSpec((1, cout), lambda n, i: (0, 0)),
            pl.BlockSpec((1, cout), lambda n, i: (0, 0)),
        ],
        out_specs=pl.BlockSpec((None, th, W, cout), lambda n, i: (n, i, 0, 0)),
        compiler_params=pltpu.CompilerParams(
            dimension_semantics=("parallel", "parallel"),
            vmem_limit_bytes=_vmem_limit(est)),
    )(x_nhwc, w, s, b)


def conv3x3_conv1x1_bn_add_relu(out1, w2, s2, b2, w3, s3, b3, sc,
                                *, out_dtype=jnp.float32):
    """H-tiled fused conv2(3x3)+BN+ReLU + conv3(1x1)+BN + residual + ReLU."""
    N, ho, wo, c1 = out1.shape
    cmid = w2.shape[-1]
    cexp = w3.shape[1]
    th = _pick_row_tile(ho, wo, target_rows=512)
    grid = (N, ho // th)
    last = ho - 1
    sc_bytes = jnp.dtype(sc.dtype).itemsize

    est = 3 * (2 * (th * wo * c1 * 2 + 2 * wo * c1 * 2
                    + th * wo * cexp * sc_bytes + th * wo * cexp * 4)
               + 9 * c1 * cmid * 2 + cmid * cexp * 2
               + 3 * (th + 2) * wo * c1 * 2
               + th * wo * (cmid + cexp) * 4)

    return pl.pallas_call(
        _conv3x3_conv1x1_residual_kernel,
        out_shape=jax.ShapeDtypeStruct((N, ho, wo, cexp), out_dtype),
        grid=grid,
        in_specs=[
            # main tile + one-row top/bottom halos via clamped index maps
            pl.BlockSpec((None, th, wo, c1), lambda n, i: (n, i, 0, 0)),
            pl.BlockSpec((None, 1, wo, c1),
                         lambda n, i: (n, jnp.maximum(i * th - 1, 0), 0, 0)),
            pl.BlockSpec((None, 1, wo, c1),
                         lambda n, i: (n, jnp.minimum(i * th + th, last), 0, 0)),
            pl.BlockSpec((3, 3, c1, cmid), lambda n, i: (0, 0, 0, 0)),
            pl.BlockSpec((1, cmid), lambda n, i: (0, 0)),
            pl.BlockSpec((1, cmid), lambda n, i: (0, 0)),
            pl.BlockSpec((cmid, cexp), lambda n, i: (0, 0)),
            pl.BlockSpec((1, cexp), lambda n, i: (0, 0)),
            pl.BlockSpec((1, cexp), lambda n, i: (0, 0)),
            pl.BlockSpec((None, th, wo, cexp), lambda n, i: (n, i, 0, 0)),
        ],
        out_specs=pl.BlockSpec((None, th, wo, cexp), lambda n, i: (n, i, 0, 0)),
        compiler_params=pltpu.CompilerParams(
            dimension_semantics=("parallel", "parallel"),
            vmem_limit_bytes=_vmem_limit(est)),
    )(out1, out1, out1, w2, s2, b2, w3, s3, b3, sc)


# ----------------------------------------------------------------------------
# BottleNeck forward (mirrors the PyTorch module, mul = 4)
# ----------------------------------------------------------------------------
def _fold_bn(gamma, beta, mean, var):
    scale = gamma / jnp.sqrt(var + BN_EPS)
    bias = beta - mean * scale
    return scale.reshape(1, -1), bias.reshape(1, -1)


def init_bottleneck_params(key, in_planes, out_planes):
    exp = out_planes * MUL
    kw1, kw2, kw3, kwsc, kb1, kb2, kb3, kbsc = jax.random.split(key, 8)

    def bn_params(k, c):
        kg, kb, km, kv = jax.random.split(k, 4)
        gamma = 1.0 + 0.1 * jax.random.normal(kg, (c,), jnp.float32)
        beta = 0.1 * jax.random.normal(kb, (c,), jnp.float32)
        mean = 0.05 * jax.random.normal(km, (c,), jnp.float32)
        var = jnp.abs(0.1 * jax.random.normal(kv, (c,), jnp.float32)) + 1.0
        return gamma, beta, mean, var

    p = {}
    # conv weights channels-last: 1x1 -> (Cin, Cout), 3x3 -> (3, 3, Cin, Cout)
    p["w1"] = 0.2 * jax.random.normal(kw1, (in_planes, out_planes), jnp.float32)
    p["s1"], p["b1"] = _fold_bn(*bn_params(kb1, out_planes))
    p["w2"] = 0.2 * jax.random.normal(kw2, (3, 3, out_planes, out_planes), jnp.float32)
    p["s2"], p["b2"] = _fold_bn(*bn_params(kb2, out_planes))
    p["w3"] = 0.2 * jax.random.normal(kw3, (out_planes, exp), jnp.float32)
    p["s3"], p["b3"] = _fold_bn(*bn_params(kb3, exp))
    p["w_sc"] = 0.2 * jax.random.normal(kwsc, (in_planes, exp), jnp.float32)
    p["s_sc"], p["b_sc"] = _fold_bn(*bn_params(kbsc, exp))
    return p


def bottleneck_forward(x_nchw, p, *, in_planes, out_planes, stride):
    x = jnp.transpose(x_nchw, (0, 2, 3, 1))  # NCHW -> NHWC (interface is NCHW)
    N, H, W, _ = x.shape
    assert H % stride == 0 and W % stride == 0
    use_proj = (stride != 1) or (in_planes != out_planes * MUL)

    bf16 = jnp.bfloat16
    w1 = p["w1"].astype(bf16)
    w2 = p["w2"].astype(bf16)
    w3 = p["w3"].astype(bf16)

    if use_proj:
        out1, sc = fused_conv1_shortcut(
            x, w1, p["s1"], p["b1"],
            p["w_sc"].astype(bf16), p["s_sc"], p["b_sc"], stride=stride)
    else:
        out1 = conv1x1_bn_relu(x, w1, p["s1"], p["b1"])
        sc = x  # identity shortcut (f32); added in f32 inside the fused kernel

    out = conv3x3_conv1x1_bn_add_relu(out1, w2, p["s2"], p["b2"],
                                      w3, p["s3"], p["b3"], sc)   # (N,ho,wo,cexp) f32
    return jnp.transpose(out, (0, 3, 1, 2))  # NHWC -> NCHW


# ----------------------------------------------------------------------------
# Pure-JAX reference (lax.conv, mirroring the kernels' bf16 rounding)
# ----------------------------------------------------------------------------
def bottleneck_reference(x_nchw, p, *, in_planes, out_planes, stride):
    bf16, f32 = jnp.bfloat16, jnp.float32

    def bn(y, s, b):
        return y * s.reshape(1, -1, 1, 1) + b.reshape(1, -1, 1, 1)

    def conv(y, w_oihw, s, pad):
        return jax.lax.conv_general_dilated(
            y.astype(bf16), w_oihw.astype(bf16), (s, s), pad,
            dimension_numbers=("NCHW", "OIHW", "NCHW"),
            preferred_element_type=f32)

    def q(y):  # mimic bf16 intermediate storage
        return y.astype(bf16).astype(f32)

    w1 = p["w1"].T[:, :, None, None]
    w2 = jnp.transpose(p["w2"], (3, 2, 0, 1))
    w3 = p["w3"].T[:, :, None, None]
    wsc = p["w_sc"].T[:, :, None, None]

    out = q(jax.nn.relu(bn(conv(x_nchw, w1, stride, "VALID"), p["s1"], p["b1"])))
    out = q(jax.nn.relu(bn(conv(out, w2, 1, [(1, 1), (1, 1)]), p["s2"], p["b2"])))
    out = bn(conv(out, w3, 1, "VALID"), p["s3"], p["b3"])
    if stride != 1 or in_planes != out_planes * MUL:
        sc = q(bn(conv(x_nchw, wsc, stride, "VALID"), p["s_sc"], p["b_sc"]))
    else:
        sc = x_nchw.astype(f32)
    return jax.nn.relu(out + sc)


# ----------------------------------------------------------------------------
if __name__ == "__main__":
    key = jax.random.PRNGKey(0)
    kx1, kx2, kp1, kp2 = jax.random.split(key, 4)

    # Case 1: projection shortcut (stride-2 downsample block).
    in_planes, out_planes, stride = 4, 4, 2
    x1 = jax.random.normal(kx1, (2, in_planes, 16, 16), jnp.float32)  # NCHW
    p1 = init_bottleneck_params(kp1, in_planes, out_planes)
    fwd1 = jax.jit(functools.partial(bottleneck_forward, in_planes=in_planes,
                                     out_planes=out_planes, stride=stride))
    out1 = jax.block_until_ready(fwd1(x1, p1))
    ref1 = bottleneck_reference(x1, p1, in_planes=in_planes,
                                out_planes=out_planes, stride=stride)
    assert out1.shape == (2, out_planes * MUL, 8, 8), out1.shape
    assert jnp.allclose(out1, ref1, atol=1e-2, rtol=1e-2), \
        float(jnp.max(jnp.abs(out1 - ref1)))

    # Case 2: identity shortcut (stride 1, in_planes == out_planes * MUL).
    in_planes, out_planes, stride = 16, 4, 1
    x2 = jax.random.normal(kx2, (2, in_planes, 8, 8), jnp.float32)    # NCHW
    p2 = init_bottleneck_params(kp2, in_planes, out_planes)
    fwd2 = jax.jit(functools.partial(bottleneck_forward, in_planes=in_planes,
                                     out_planes=out_planes, stride=stride))
    out2 = jax.block_until_ready(fwd2(x2, p2))
    ref2 = bottleneck_reference(x2, p2, in_planes=in_planes,
                                out_planes=out_planes, stride=stride)
    assert out2.shape == (2, out_planes * MUL, 8, 8), out2.shape
    assert jnp.allclose(out2, ref2, atol=1e-2, rtol=1e-2), \
        float(jnp.max(jnp.abs(out2 - ref2)))

    print("KERNEL_OK")
</pallas_src>

<mosaic_0001>
module attributes {stable_mosaic.version = 11 : i64} {
  func.func @_conv3x3_conv1x1_residual_kernel(%arg0: i32, %arg1: i32, %arg2: memref<1x4x8x4xbf16, #tpu.memory_space<vmem>>, %arg3: memref<1x1x8x4xbf16, #tpu.memory_space<vmem>>, %arg4: memref<1x1x8x4xbf16, #tpu.memory_space<vmem>>, %arg5: memref<3x3x4x4xbf16, #tpu.memory_space<vmem>>, %arg6: memref<1x4xf32, #tpu.memory_space<vmem>>, %arg7: memref<1x4xf32, #tpu.memory_space<vmem>>, %arg8: memref<4x16xbf16, #tpu.memory_space<vmem>>, %arg9: memref<1x16xf32, #tpu.memory_space<vmem>>, %arg10: memref<1x16xf32, #tpu.memory_space<vmem>>, %arg11: memref<1x4x8x16xbf16, #tpu.memory_space<vmem>>, %arg12: memref<1x4x8x16xf32, #tpu.memory_space<vmem>>) attributes {dimension_semantics = [#tpu.dimension_semantics<parallel>, #tpu.dimension_semantics<parallel>], iteration_bounds = array<i64: 2, 2>, scalar_prefetch = 0 : i64, scratch_operands = 0 : i64, tpu.core_type = #tpu.core_type<tc>, window_params = [{transform_indices = @transform_0, window_bounds = array<i64: 1, 4, 8, 4>}, {transform_indices = @transform_1, window_bounds = array<i64: 1, 1, 8, 4>}, {transform_indices = @transform_2, window_bounds = array<i64: 1, 1, 8, 4>}, {pipeline_mode = #tpu.pipeline_mode<synchronous>, transform_indices = @transform_3, window_bounds = array<i64: 3, 3, 4, 4>}, {pipeline_mode = #tpu.pipeline_mode<synchronous>, transform_indices = @transform_4, window_bounds = array<i64: 1, 4>}, {pipeline_mode = #tpu.pipeline_mode<synchronous>, transform_indices = @transform_5, window_bounds = array<i64: 1, 4>}, {pipeline_mode = #tpu.pipeline_mode<synchronous>, transform_indices = @transform_6, window_bounds = array<i64: 4, 16>}, {pipeline_mode = #tpu.pipeline_mode<synchronous>, transform_indices = @transform_7, window_bounds = array<i64: 1, 16>}, {pipeline_mode = #tpu.pipeline_mode<synchronous>, transform_indices = @transform_8, window_bounds = array<i64: 1, 16>}, {transform_indices = @transform_9, window_bounds = array<i64: 1, 4, 8, 16>}, {transform_indices = @transform_10, window_bounds = array<i64: 1, 4, 8, 16>}]} {
    %c0 = arith.constant 0 : index
    %c0_0 = arith.constant 0 : index
    %c0_1 = arith.constant 0 : index
    %c0_2 = arith.constant 0 : index
    %0 = vector.load %arg3[%c0, %c0_0, %c0_1, %c0_2] : memref<1x1x8x4xbf16, #tpu.memory_space<vmem>>, vector<1x1x8x4xbf16>
    %1 = vector.shape_cast %0 : vector<1x1x8x4xbf16> to vector<1x8x4xbf16>
    %c0_3 = arith.constant 0 : index
    %c0_4 = arith.constant 0 : index
    %c0_5 = arith.constant 0 : index
    %c0_6 = arith.constant 0 : index
    %2 = vector.load %arg4[%c0_3, %c0_4, %c0_5, %c0_6] : memref<1x1x8x4xbf16, #tpu.memory_space<vmem>>, vector<1x1x8x4xbf16>
    %3 = vector.shape_cast %2 : vector<1x1x8x4xbf16> to vector<1x8x4xbf16>
    %c0_i32 = arith.constant 0 : i32
    %4 = arith.cmpi sgt, %arg1, %c0_i32 : i32
    %5 = arith.extui %4 : i1 to i32
    %6 = arith.sitofp %5 : i32 to f32
    %7 = arith.truncf %6 : f32 to bf16
    %8 = vector.broadcast %7 : bf16 to vector<1x8x4xbf16>
    %9 = arith.mulf %1, %8 : vector<1x8x4xbf16>
    %c1_i32 = arith.constant 1 : i32
    %10 = arith.cmpi slt, %arg1, %c1_i32 : i32
    %11 = arith.extui %10 : i1 to i32
    %12 = arith.sitofp %11 : i32 to f32
    %13 = arith.truncf %12 : f32 to bf16
    %14 = vector.broadcast %13 : bf16 to vector<1x8x4xbf16>
    %15 = arith.mulf %3, %14 : vector<1x8x4xbf16>
    %c0_7 = arith.constant 0 : index
    %c0_8 = arith.constant 0 : index
    %c0_9 = arith.constant 0 : index
    %c0_10 = arith.constant 0 : index
    %16 = vector.load %arg2[%c0_7, %c0_8, %c0_9, %c0_10] : memref<1x4x8x4xbf16, #tpu.memory_space<vmem>>, vector<1x4x8x4xbf16>
    %17 = vector.shape_cast %16 : vector<1x4x8x4xbf16> to vector<4x8x4xbf16>
    %18 = tpu.concatenate %9, %17, %15 in 0 : vector<1x8x4xbf16>, vector<4x8x4xbf16>, vector<1x8x4xbf16> -> vector<6x8x4xbf16>
    %cst = arith.constant 0.000000e+00 : bf16
    %19 = vector.broadcast %cst : bf16 to vector<6x1x4xbf16>
    %20 = vector.extract_strided_slice %18 {offsets = [0, 0, 0], sizes = [6, 7, 4], strides = [1, 1, 1]} : vector<6x8x4xbf16> to vector<6x7x4xbf16>
    %21 = tpu.concatenate %19, %20 in 1 : vector<6x1x4xbf16>, vector<6x7x4xbf16> -> vector<6x8x4xbf16>
    %22 = vector.extract_strided_slice %18 {offsets = [0, 1, 0], sizes = [6, 7, 4], strides = [1, 1, 1]} : vector<6x8x4xbf16> to vector<6x7x4xbf16>
    %23 = tpu.concatenate %22, %19 in 1 : vector<6x7x4xbf16>, vector<6x1x4xbf16> -> vector<6x8x4xbf16>
    %cst_11 = arith.constant 0.000000e+00 : f32
    %24 = vector.broadcast %cst_11 : f32 to vector<32x4xf32>
    %25 = vector.extract_strided_slice %21 {offsets = [0, 0, 0], sizes = [4, 8, 4], strides = [1, 1, 1]} : vector<6x8x4xbf16> to vector<4x8x4xbf16>
    %26 = vector.shape_cast %25 : vector<4x8x4xbf16> to vector<32x4xbf16>
    %c0_12 = arith.constant 0 : index
    %c0_13 = arith.constant 0 : index
    %c0_14 = arith.constant 0 : index
    %c0_15 = arith.constant 0 : index
    %27 = vector.load %arg5[%c0_12, %c0_13, %c0_14, %c0_15] : memref<3x3x4x4xbf16, #tpu.memory_space<vmem>>, vector<1x1x4x4xbf16>
    %28 = vector.shape_cast %27 : vector<1x1x4x4xbf16> to vector<4x4xbf16>
    %cst_16 = arith.constant dense<0.000000e+00> : vector<32x4xf32>
    %29 = tpu.matmul %26, %28, %cst_16 {dimension_numbers = #tpu.dot_dimension_numbers<[1], [0], [0], [1], [0, 0, 1, 1], [], []>} : vector<32x4xbf16>, vector<4x4xbf16>, vector<32x4xf32> -> vector<32x4xf32>
    %30 = arith.addf %24, %29 : vector<32x4xf32>
    %31 = vector.extract_strided_slice %18 {offsets = [0, 0, 0], sizes = [4, 8, 4], strides = [1, 1, 1]} : vector<6x8x4xbf16> to vector<4x8x4xbf16>
    %32 = vector.shape_cast %31 : vector<4x8x4xbf16> to vector<32x4xbf16>
    %c0_17 = arith.constant 0 : index
    %c1 = arith.constant 1 : index
    %c0_18 = arith.constant 0 : index
    %c0_19 = arith.constant 0 : index
    %33 = vector.load %arg5[%c0_17, %c1, %c0_18, %c0_19] : memref<3x3x4x4xbf16, #tpu.memory_space<vmem>>, vector<1x1x4x4xbf16>
    %34 = vector.shape_cast %33 : vector<1x1x4x4xbf16> to vector<4x4xbf16>
    %cst_20 = arith.constant dense<0.000000e+00> : vector<32x4xf32>
    %35 = tpu.matmul %32, %34, %cst_20 {dimension_numbers = #tpu.dot_dimension_numbers<[1], [0], [0], [1], [0, 0, 1, 1], [], []>} : vector<32x4xbf16>, vector<4x4xbf16>, vector<32x4xf32> -> vector<32x4xf32>
    %36 = arith.addf %30, %35 : vector<32x4xf32>
    %37 = vector.extract_strided_slice %23 {offsets = [0, 0, 0], sizes = [4, 8, 4], strides = [1, 1, 1]} : vector<6x8x4xbf16> to vector<4x8x4xbf16>
    %38 = vector.shape_cast %37 : vector<4x8x4xbf16> to vector<32x4xbf16>
    %c0_21 = arith.constant 0 : index
    %c2 = arith.constant 2 : index
    %c0_22 = arith.constant 0 : index
    %c0_23 = arith.constant 0 : index
    %39 = vector.load %arg5[%c0_21, %c2, %c0_22, %c0_23] : memref<3x3x4x4xbf16, #tpu.memory_space<vmem>>, vector<1x1x4x4xbf16>
    %40 = vector.shape_cast %39 : vector<1x1x4x4xbf16> to vector<4x4xbf16>
    %cst_24 = arith.constant dense<0.000000e+00> : vector<32x4xf32>
    %41 = tpu.matmul %38, %40, %cst_24 {dimension_numbers = #tpu.dot_dimension_numbers<[1], [0], [0], [1], [0, 0, 1, 1], [], []>} : vector<32x4xbf16>, vector<4x4xbf16>, vector<32x4xf32> -> vector<32x4xf32>
    %42 = arith.addf %36, %41 : vector<32x4xf32>
    %43 = vector.extract_strided_slice %21 {offsets = [1, 0, 0], sizes = [4, 8, 4], strides = [1, 1, 1]} : vector<6x8x4xbf16> to vector<4x8x4xbf16>
    %44 = vector.shape_cast %43 : vector<4x8x4xbf16> to vector<32x4xbf16>
    %c1_25 = arith.constant 1 : index
    %c0_26 = arith.constant 0 : index
    %c0_27 = arith.constant 0 : index
    %c0_28 = arith.constant 0 : index
    %45 = vector.load %arg5[%c1_25, %c0_26, %c0_27, %c0_28] : memref<3x3x4x4xbf16, #tpu.memory_space<vmem>>, vector<1x1x4x4xbf16>
    %46 = vector.shape_cast %45 : vector<1x1x4x4xbf16> to vector<4x4xbf16>
    %cst_29 = arith.constant dense<0.000000e+00> : vector<32x4xf32>
    %47 = tpu.matmul %44, %46, %cst_29 {dimension_numbers = #tpu.dot_dimension_numbers<[1], [0], [0], [1], [0, 0, 1, 1], [], []>} : vector<32x4xbf16>, vector<4x4xbf16>, vector<32x4xf32> -> vector<32x4xf32>
    %48 = arith.addf %42, %47 : vector<32x4xf32>
    %49 = vector.extract_strided_slice %18 {offsets = [1, 0, 0], sizes = [4, 8, 4], strides = [1, 1, 1]} : vector<6x8x4xbf16> to vector<4x8x4xbf16>
    %50 = vector.shape_cast %49 : vector<4x8x4xbf16> to vector<32x4xbf16>
    %c1_30 = arith.constant 1 : index
    %c1_31 = arith.constant 1 : index
    %c0_32 = arith.constant 0 : index
    %c0_33 = arith.constant 0 : index
    %51 = vector.load %arg5[%c1_30, %c1_31, %c0_32, %c0_33] : memref<3x3x4x4xbf16, #tpu.memory_space<vmem>>, vector<1x1x4x4xbf16>
    %52 = vector.shape_cast %51 : vector<1x1x4x4xbf16> to vector<4x4xbf16>
    %cst_34 = arith.constant dense<0.000000e+00> : vector<32x4xf32>
    %53 = tpu.matmul %50, %52, %cst_34 {dimension_numbers = #tpu.dot_dimension_numbers<[1], [0], [0], [1], [0, 0, 1, 1], [], []>} : vector<32x4xbf16>, vector<4x4xbf16>, vector<32x4xf32> -> vector<32x4xf32>
    %54 = arith.addf %48, %53 : vector<32x4xf32>
    %55 = vector.extract_strided_slice %23 {offsets = [1, 0, 0], sizes = [4, 8, 4], strides = [1, 1, 1]} : vector<6x8x4xbf16> to vector<4x8x4xbf16>
    %56 = vector.shape_cast %55 : vector<4x8x4xbf16> to vector<32x4xbf16>
    %c1_35 = arith.constant 1 : index
    %c2_36 = arith.constant 2 : index
    %c0_37 = arith.constant 0 : index
    %c0_38 = arith.constant 0 : index
    %57 = vector.load %arg5[%c1_35, %c2_36, %c0_37, %c0_38] : memref<3x3x4x4xbf16, #tpu.memory_space<vmem>>, vector<1x1x4x4xbf16>
    %58 = vector.shape_cast %57 : vector<1x1x4x4xbf16> to vector<4x4xbf16>
    %cst_39 = arith.constant dense<0.000000e+00> : vector<32x4xf32>
    %59 = tpu.matmul %56, %58, %cst_39 {dimension_numbers = #tpu.dot_dimension_numbers<[1], [0], [0], [1], [0, 0, 1, 1], [], []>} : vector<32x4xbf16>, vector<4x4xbf16>, vector<32x4xf32> -> vector<32x4xf32>
    %60 = arith.addf %54, %59 : vector<32x4xf32>
    %61 = vector.extract_strided_slice %21 {offsets = [2, 0, 0], sizes = [4, 8, 4], strides = [1, 1, 1]} : vector<6x8x4xbf16> to vector<4x8x4xbf16>
    %62 = vector.shape_cast %61 : vector<4x8x4xbf16> to vector<32x4xbf16>
    %c2_40 = arith.constant 2 : index
    %c0_41 = arith.constant 0 : index
    %c0_42 = arith.constant 0 : index
    %c0_43 = arith.constant 0 : index
    %63 = vector.load %arg5[%c2_40, %c0_41, %c0_42, %c0_43] : memref<3x3x4x4xbf16, #tpu.memory_space<vmem>>, vector<1x1x4x4xbf16>
    %64 = vector.shape_cast %63 : vector<1x1x4x4xbf16> to vector<4x4xbf16>
    %cst_44 = arith.constant dense<0.000000e+00> : vector<32x4xf32>
    %65 = tpu.matmul %62, %64, %cst_44 {dimension_numbers = #tpu.dot_dimension_numbers<[1], [0], [0], [1], [0, 0, 1, 1], [], []>} : vector<32x4xbf16>, vector<4x4xbf16>, vector<32x4xf32> -> vector<32x4xf32>
    %66 = arith.addf %60, %65 : vector<32x4xf32>
    %67 = vector.extract_strided_slice %18 {offsets = [2, 0, 0], sizes = [4, 8, 4], strides = [1, 1, 1]} : vector<6x8x4xbf16> to vector<4x8x4xbf16>
    %68 = vector.shape_cast %67 : vector<4x8x4xbf16> to vector<32x4xbf16>
    %c2_45 = arith.constant 2 : index
    %c1_46 = arith.constant 1 : index
    %c0_47 = arith.constant 0 : index
    %c0_48 = arith.constant 0 : index
    %69 = vector.load %arg5[%c2_45, %c1_46, %c0_47, %c0_48] : memref<3x3x4x4xbf16, #tpu.memory_space<vmem>>, vector<1x1x4x4xbf16>
    %70 = vector.shape_cast %69 : vector<1x1x4x4xbf16> to vector<4x4xbf16>
    %cst_49 = arith.constant dense<0.000000e+00> : vector<32x4xf32>
    %71 = tpu.matmul %68, %70, %cst_49 {dimension_numbers = #tpu.dot_dimension_numbers<[1], [0], [0], [1], [0, 0, 1, 1], [], []>} : vector<32x4xbf16>, vector<4x4xbf16>, vector<32x4xf32> -> vector<32x4xf32>
    %72 = arith.addf %66, %71 : vector<32x4xf32>
    %73 = vector.extract_strided_slice %23 {offsets = [2, 0, 0], sizes = [4, 8, 4], strides = [1, 1, 1]} : vector<6x8x4xbf16> to vector<4x8x4xbf16>
    %74 = vector.shape_cast %73 : vector<4x8x4xbf16> to vector<32x4xbf16>
    %c2_50 = arith.constant 2 : index
    %c2_51 = arith.constant 2 : index
    %c0_52 = arith.constant 0 : index
    %c0_53 = arith.constant 0 : index
    %75 = vector.load %arg5[%c2_50, %c2_51, %c0_52, %c0_53] : memref<3x3x4x4xbf16, #tpu.memory_space<vmem>>, vector<1x1x4x4xbf16>
    %76 = vector.shape_cast %75 : vector<1x1x4x4xbf16> to vector<4x4xbf16>
    %cst_54 = arith.constant dense<0.000000e+00> : vector<32x4xf32>
    %77 = tpu.matmul %74, %76, %cst_54 {dimension_numbers = #tpu.dot_dimension_numbers<[1], [0], [0], [1], [0, 0, 1, 1], [], []>} : vector<32x4xbf16>, vector<4x4xbf16>, vector<32x4xf32> -> vector<32x4xf32>
    %78 = arith.addf %72, %77 : vector<32x4xf32>
    %c0_55 = arith.constant 0 : index
    %c0_56 = arith.constant 0 : index
    %79 = vector.load %arg6[%c0_55, %c0_56] : memref<1x4xf32, #tpu.memory_space<vmem>>, vector<1x4xf32>
    %80 = vector.broadcast %79 : vector<1x4xf32> to vector<32x4xf32>
    %81 = arith.mulf %78, %80 : vector<32x4xf32>
    %c0_57 = arith.constant 0 : index
    %c0_58 = arith.constant 0 : index
    %82 = vector.load %arg7[%c0_57, %c0_58] : memref<1x4xf32, #tpu.memory_space<vmem>>, vector<1x4xf32>
    %83 = vector.broadcast %82 : vector<1x4xf32> to vector<32x4xf32>
    %84 = arith.addf %81, %83 : vector<32x4xf32>
    %cst_59 = arith.constant 0.000000e+00 : f32
    %85 = vector.broadcast %cst_59 : f32 to vector<32x4xf32>
    %86 = arith.maximumf %84, %85 : vector<32x4xf32>
    %87 = arith.truncf %86 : vector<32x4xf32> to vector<32x4xbf16>
    %c0_60 = arith.constant 0 : index
    %c0_61 = arith.constant 0 : index
    %88 = vector.load %arg8[%c0_60, %c0_61] : memref<4x16xbf16, #tpu.memory_space<vmem>>, vector<4x16xbf16>
    %cst_62 = arith.constant dense<0.000000e+00> : vector<32x16xf32>
    %89 = tpu.matmul %87, %88, %cst_62 {dimension_numbers = #tpu.dot_dimension_numbers<[1], [0], [0], [1], [0, 0, 1, 1], [], []>} : vector<32x4xbf16>, vector<4x16xbf16>, vector<32x16xf32> -> vector<32x16xf32>
    %c0_63 = arith.constant 0 : index
    %c0_64 = arith.constant 0 : index
    %90 = vector.load %arg9[%c0_63, %c0_64] : memref<1x16xf32, #tpu.memory_space<vmem>>, vector<1x16xf32>
    %91 = vector.broadcast %90 : vector<1x16xf32> to vector<32x16xf32>
    %92 = arith.mulf %89, %91 : vector<32x16xf32>
    %c0_65 = arith.constant 0 : index
    %c0_66 = arith.constant 0 : index
    %93 = vector.load %arg10[%c0_65, %c0_66] : memref<1x16xf32, #tpu.memory_space<vmem>>, vector<1x16xf32>
    %94 = vector.broadcast %93 : vector<1x16xf32> to vector<32x16xf32>
    %95 = arith.addf %92, %94 : vector<32x16xf32>
    %c0_67 = arith.constant 0 : index
    %c0_68 = arith.constant 0 : index
    %c0_69 = arith.constant 0 : index
    %c0_70 = arith.constant 0 : index
    %96 = vector.load %arg11[%c0_67, %c0_68, %c0_69, %c0_70] : memref<1x4x8x16xbf16, #tpu.memory_space<vmem>>, vector<1x4x8x16xbf16>
    %97 = vector.shape_cast %96 : vector<1x4x8x16xbf16> to vector<4x8x16xbf16>
    %98 = vector.shape_cast %97 : vector<4x8x16xbf16> to vector<32x16xbf16>
    %99 = arith.extf %98 : vector<32x16xbf16> to vector<32x16xf32>
    %100 = arith.addf %95, %99 : vector<32x16xf32>
    %cst_71 = arith.constant 0.000000e+00 : f32
    %101 = vector.broadcast %cst_71 : f32 to vector<32x16xf32>
    %102 = arith.maximumf %100, %101 : vector<32x16xf32>
    %103 = vector.shape_cast %102 : vector<32x16xf32> to vector<4x8x16xf32>
    %c0_72 = arith.constant 0 : index
    %c0_73 = arith.constant 0 : index
    %c0_74 = arith.constant 0 : index
    %c0_75 = arith.constant 0 : index
    %104 = vector.load %arg12[%c0_72, %c0_73, %c0_74, %c0_75] : memref<1x4x8x16xf32, #tpu.memory_space<vmem>>, vector<1x4x8x16xf32>
    %105 = vector.shape_cast %104 : vector<1x4x8x16xf32> to vector<4x8x16xf32>
    %106 = vector.shape_cast %103 : vector<4x8x16xf32> to vector<1x4x8x16xf32>
    tpu.vector_store %arg12[%c0_72, %c0_73, %c0_74, %c0_75], %106 {strides = array<i32>} : memref<1x4x8x16xf32, #tpu.memory_space<vmem>>, vector<1x4x8x16xf32>,
    return
  }
  func.func @transform_0(%arg0: i32, %arg1: i32) -> (i32, i32, i32, i32) {
    %c0_i32 = arith.constant 0 : i32
    %c0_i32_0 = arith.constant 0 : i32
    %c0_i32_1 = arith.constant 0 : i32
    return %arg0, %arg1, %c0_i32, %c0_i32_0 : i32, i32, i32, i32
  }
  func.func @transform_1(%arg0: i32, %arg1: i32) -> (i32, i32, i32, i32) {
    %c4_i32 = arith.constant 4 : i32
    %0 = arith.muli %arg1, %c4_i32 : i32
    %c1_i32 = arith.constant 1 : i32
    %1 = arith.subi %0, %c1_i32 : i32
    %c0_i32 = arith.constant 0 : i32
    %2 = arith.maxsi %1, %c0_i32 : i32
    %c0_i32_0 = arith.constant 0 : i32
    %c0_i32_1 = arith.constant 0 : i32
    %c0_i32_2 = arith.constant 0 : i32
    return %arg0, %2, %c0_i32_0, %c0_i32_1 : i32, i32, i32, i32
  }
  func.func @transform_2(%arg0: i32, %arg1: i32) -> (i32, i32, i32, i32) {
    %c4_i32 = arith.constant 4 : i32
    %0 = arith.muli %arg1, %c4_i32 : i32
    %c4_i32_0 = arith.constant 4 : i32
    %1 = arith.addi %0, %c4_i32_0 : i32
    %c7_i32 = arith.constant 7 : i32
    %2 = arith.minsi %1, %c7_i32 : i32
    %c0_i32 = arith.constant 0 : i32
    %c0_i32_1 = arith.constant 0 : i32
    %c0_i32_2 = arith.constant 0 : i32
    return %arg0, %2, %c0_i32, %c0_i32_1 : i32, i32, i32, i32
  }
  func.func @transform_3(%arg0: i32, %arg1: i32) -> (i32, i32, i32, i32) {
    %c0_i32 = arith.constant 0 : i32
    %c0_i32_0 = arith.constant 0 : i32
    %c0_i32_1 = arith.constant 0 : i32
    %c0_i32_2 = arith.constant 0 : i32
    %c0_i32_3 = arith.constant 0 : i32
    return %c0_i32, %c0_i32_0, %c0_i32_1, %c0_i32_2 : i32, i32, i32, i32
  }
  func.func @transform_4(%arg0: i32, %arg1: i32) -> (i32, i32) {
    %c0_i32 = arith.constant 0 : i32
    %c0_i32_0 = arith.constant 0 : i32
    %c0_i32_1 = arith.constant 0 : i32
    return %c0_i32, %c0_i32_0 : i32, i32
  }
  func.func @transform_5(%arg0: i32, %arg1: i32) -> (i32, i32) {
    %c0_i32 = arith.constant 0 : i32
    %c0_i32_0 = arith.constant 0 : i32
    %c0_i32_1 = arith.constant 0 : i32
    return %c0_i32, %c0_i32_0 : i32, i32
  }
  func.func @transform_6(%arg0: i32, %arg1: i32) -> (i32, i32) {
    %c0_i32 = arith.constant 0 : i32
    %c0_i32_0 = arith.constant 0 : i32
    %c0_i32_1 = arith.constant 0 : i32
    return %c0_i32, %c0_i32_0 : i32, i32
  }
  func.func @transform_7(%arg0: i32, %arg1: i32) -> (i32, i32) {
    %c0_i32 = arith.constant 0 : i32
    %c0_i32_0 = arith.constant 0 : i32
    %c0_i32_1 = arith.constant 0 : i32
    return %c0_i32, %c0_i32_0 : i32, i32
  }
  func.func @transform_8(%arg0: i32, %arg1: i32) -> (i32, i32) {
    %c0_i32 = arith.constant 0 : i32
    %c0_i32_0 = arith.constant 0 : i32
    %c0_i32_1 = arith.constant 0 : i32
    return %c0_i32, %c0_i32_0 : i32, i32
  }
  func.func @transform_9(%arg0: i32, %arg1: i32) -> (i32, i32, i32, i32) {
    %c0_i32 = arith.constant 0 : i32
    %c0_i32_0 = arith.constant 0 : i32
    %c0_i32_1 = arith.constant 0 : i32
    return %arg0, %arg1, %c0_i32, %c0_i32_0 : i32, i32, i32, i32
  }
  func.func @transform_10(%arg0: i32, %arg1: i32) -> (i32, i32, i32, i32) {
    %c0_i32 = arith.constant 0 : i32
    %c0_i32_0 = arith.constant 0 : i32
    %c0_i32_1 = arith.constant 0 : i32
    return %arg0, %arg1, %c0_i32, %c0_i32_0 : i32, i32, i32, i32
  }
}

module attributes {stable_mosaic.version = 11 : i64} {
  func.func @_fused_conv1_shortcut_kernel(%arg0: i32, %arg1: i32, %arg2: memref<1x4x1x16x4xf32, #tpu.memory_space<vmem>>, %arg3: memref<4x20xbf16, #tpu.memory_space<vmem>>, %arg4: memref<1x20xf32, #tpu.memory_space<vmem>>, %arg5: memref<1x20xf32, #tpu.memory_space<vmem>>, %arg6: memref<1x4x8x4xbf16, #tpu.memory_space<vmem>>, %arg7: memref<1x4x8x16xbf16, #tpu.memory_space<vmem>>) attributes {dimension_semantics = [#tpu.dimension_semantics<parallel>, #tpu.dimension_semantics<parallel>], iteration_bounds = array<i64: 2, 2>, scalar_prefetch = 0 : i64, scratch_operands = 0 : i64, tpu.core_type = #tpu.core_type<tc>, window_params = [{transform_indices = @transform_0, window_bounds = array<i64: 1, 4, 1, 16, 4>}, {pipeline_mode = #tpu.pipeline_mode<synchronous>, transform_indices = @transform_1, window_bounds = array<i64: 4, 20>}, {pipeline_mode = #tpu.pipeline_mode<synchronous>, transform_indices = @transform_2, window_bounds = array<i64: 1, 20>}, {pipeline_mode = #tpu.pipeline_mode<synchronous>, transform_indices = @transform_3, window_bounds = array<i64: 1, 20>}, {transform_indices = @transform_4, window_bounds = array<i64: 1, 4, 8, 4>}, {transform_indices = @transform_5, window_bounds = array<i64: 1, 4, 8, 16>}]} {
    %c0 = arith.constant 0 : index
    %c0_0 = arith.constant 0 : index
    %c0_1 = arith.constant 0 : index
    %c0_2 = arith.constant 0 : index
    %c0_3 = arith.constant 0 : index
    %0 = vector.load %arg2[%c0, %c0_0, %c0_1, %c0_2, %c0_3] : memref<1x4x1x16x4xf32, #tpu.memory_space<vmem>>, vector<1x4x1x16x4xf32>
    %1 = vector.shape_cast %0 : vector<1x4x1x16x4xf32> to vector<4x16x4xf32>
    %2 = vector.shape_cast %1 : vector<4x16x4xf32> to vector<4x8x2x4xf32>
    %3 = vector.extract_strided_slice %2 {offsets = [0, 0, 0, 0], sizes = [4, 8, 1, 4], strides = [1, 1, 1, 1]} : vector<4x8x2x4xf32> to vector<4x8x1x4xf32>
    %4 = vector.shape_cast %3 : vector<4x8x1x4xf32> to vector<4x8x4xf32>
    %5 = vector.shape_cast %4 : vector<4x8x4xf32> to vector<32x4xf32>
    %6 = arith.truncf %5 : vector<32x4xf32> to vector<32x4xbf16>
    %c0_4 = arith.constant 0 : index
    %c0_5 = arith.constant 0 : index
    %7 = vector.load %arg3[%c0_4, %c0_5] : memref<4x20xbf16, #tpu.memory_space<vmem>>, vector<4x20xbf16>
    %cst = arith.constant dense<0.000000e+00> : vector<32x20xf32>
    %8 = tpu.matmul %6, %7, %cst {dimension_numbers = #tpu.dot_dimension_numbers<[1], [0], [0], [1], [0, 0, 1, 1], [], []>} : vector<32x4xbf16>, vector<4x20xbf16>, vector<32x20xf32> -> vector<32x20xf32>
    %c0_6 = arith.constant 0 : index
    %c0_7 = arith.constant 0 : index
    %9 = vector.load %arg4[%c0_6, %c0_7] : memref<1x20xf32, #tpu.memory_space<vmem>>, vector<1x20xf32>
    %10 = vector.broadcast %9 : vector<1x20xf32> to vector<32x20xf32>
    %11 = arith.mulf %8, %10 : vector<32x20xf32>
    %c0_8 = arith.constant 0 : index
    %c0_9 = arith.constant 0 : index
    %12 = vector.load %arg5[%c0_8, %c0_9] : memref<1x20xf32, #tpu.memory_space<vmem>>, vector<1x20xf32>
    %13 = vector.broadcast %12 : vector<1x20xf32> to vector<32x20xf32>
    %14 = arith.addf %11, %13 : vector<32x20xf32>
    %15 = vector.extract_strided_slice %14 {offsets = [0, 0], sizes = [32, 16], strides = [1, 1]} : vector<32x20xf32> to vector<32x16xf32>
    %16 = vector.extract_strided_slice %14 {offsets = [0, 16], sizes = [32, 4], strides = [1, 1]} : vector<32x20xf32> to vector<32x4xf32>
    %cst_10 = arith.constant 0.000000e+00 : f32
    %17 = vector.broadcast %cst_10 : f32 to vector<32x4xf32>
    %18 = arith.maximumf %16, %17 : vector<32x4xf32>
    %19 = vector.shape_cast %15 : vector<32x16xf32> to vector<4x8x16xf32>
    %20 = arith.truncf %19 : vector<4x8x16xf32> to vector<4x8x16xbf16>
    %c0_11 = arith.constant 0 : index
    %c0_12 = arith.constant 0 : index
    %c0_13 = arith.constant 0 : index
    %c0_14 = arith.constant 0 : index
    %21 = vector.load %arg7[%c0_11, %c0_12, %c0_13, %c0_14] : memref<1x4x8x16xbf16, #tpu.memory_space<vmem>>, vector<1x4x8x16xbf16>
    %22 = vector.shape_cast %21 : vector<1x4x8x16xbf16> to vector<4x8x16xbf16>
    %23 = vector.shape_cast %20 : vector<4x8x16xbf16> to vector<1x4x8x16xbf16>
    tpu.vector_store %arg7[%c0_11, %c0_12, %c0_13, %c0_14], %23 {strides = array<i32>} : memref<1x4x8x16xbf16, #tpu.memory_space<vmem>>, vector<1x4x8x16xbf16>,
    %24 = vector.shape_cast %18 : vector<32x4xf32> to vector<4x8x4xf32>
    %25 = arith.truncf %24 : vector<4x8x4xf32> to vector<4x8x4xbf16>
    %c0_15 = arith.constant 0 : index
    %c0_16 = arith.constant 0 : index
    %c0_17 = arith.constant 0 : index
    %c0_18 = arith.constant 0 : index
    %26 = vector.load %arg6[%c0_15, %c0_16, %c0_17, %c0_18] : memref<1x4x8x4xbf16, #tpu.memory_space<vmem>>, vector<1x4x8x4xbf16>
    %27 = vector.shape_cast %26 : vector<1x4x8x4xbf16> to vector<4x8x4xbf16>
    %28 = vector.shape_cast %25 : vector<4x8x4xbf16> to vector<1x4x8x4xbf16>
    tpu.vector_store %arg6[%c0_15, %c0_16, %c0_17, %c0_18], %28 {strides = array<i32>} : memref<1x4x8x4xbf16, #tpu.memory_space<vmem>>, vector<1x4x8x4xbf16>,
    return
  }
  func.func @transform_0(%arg0: i32, %arg1: i32) -> (i32, i32, i32, i32, i32) {
    %c0_i32 = arith.constant 0 : i32
    %c0_i32_0 = arith.constant 0 : i32
    %c0_i32_1 = arith.constant 0 : i32
    %c0_i32_2 = arith.constant 0 : i32
    return %arg0, %arg1, %c0_i32, %c0_i32_0, %c0_i32_1 : i32, i32, i32, i32, i32
  }
  func.func @transform_1(%arg0: i32, %arg1: i32) -> (i32, i32) {
    %c0_i32 = arith.constant 0 : i32
    %c0_i32_0 = arith.constant 0 : i32
    %c0_i32_1 = arith.constant 0 : i32
    return %c0_i32, %c0_i32_0 : i32, i32
  }
  func.func @transform_2(%arg0: i32, %arg1: i32) -> (i32, i32) {
    %c0_i32 = arith.constant 0 : i32
    %c0_i32_0 = arith.constant 0 : i32
    %c0_i32_1 = arith.constant 0 : i32
    return %c0_i32, %c0_i32_0 : i32, i32
  }
  func.func @transform_3(%arg0: i32, %arg1: i32) -> (i32, i32) {
    %c0_i32 = arith.constant 0 : i32
    %c0_i32_0 = arith.constant 0 : i32
    %c0_i32_1 = arith.constant 0 : i32
    return %c0_i32, %c0_i32_0 : i32, i32
  }
  func.func @transform_4(%arg0: i32, %arg1: i32) -> (i32, i32, i32, i32) {
    %c0_i32 = arith.constant 0 : i32
    %c0_i32_0 = arith.constant 0 : i32
    %c0_i32_1 = arith.constant 0 : i32
    return %arg0, %arg1, %c0_i32, %c0_i32_0 : i32, i32, i32, i32
  }
  func.func @transform_5(%arg0: i32, %arg1: i32) -> (i32, i32, i32, i32) {
    %c0_i32 = arith.constant 0 : i32
    %c0_i32_0 = arith.constant 0 : i32
    %c0_i32_1 = arith.constant 0 : i32
    return %arg0, %arg1, %c0_i32, %c0_i32_0 : i32, i32, i32, i32
  }
}

</mosaic_0001>

<bundles_post_ra>
// kernel: bottleneck_forward.2
= control target key start
LH: loop header
LB: loop body
LE: loop exit
PB: predicated region body
PF: predicated region fallthrough
CT: control target
= control target key end

     0   :  { %s1155_s18 = smov 0   ;;  %s1157_s19 = smov 0   ;;  %s1348_s0 = inlined_call_operand.vmem [shape: f32[2,8,2,16,4], index: 0, kind: input, shape index: {}]   ;;  %s1349_s1 = inlined_call_operand.vmem [shape: bf16[4,20], index: 1, kind: input, shape index: {}]   ;;  %s1350_s2 = inlined_call_operand.vmem [shape: f32[1,20], index: 2, kind: input, shape index: {}]   ;;  %s1351_s3 = inlined_call_operand.vmem [shape: f32[1,20], index: 3, kind: input, shape index: {}]   ;;  %s1352_s4 = inlined_call_operand.vmem [shape: bf16[2,8,8,4], index: 4, kind: output, shape index: {0}]   ;;  %s1353_s5 = inlined_call_operand.vmem [shape: bf16[2,8,8,16], index: 5, kind: output, shape index: {1}]  }
   0x1   :  { %s1159_s20 = smov 0   ;;  %s1161_s21 = smov 0  }
   0x2   :  { %s1163_s22 = smov 0   ;;  %s1165_s23 = smov 0  }
   0x3   :  { %s1167_s24 = smov 0  }
   0x4 LB: > { %s25_s25 = sadd.s32 1, %s1113_s22  ;;  %s28_s26 = sadd.s32 1, %s1117_s23  ;;  %s1121_s24 = sphi %s1167_s24, %s16_s24   ;;  %s1117_s23 = sphi %s1165_s23, %s1359_s23   ;;  %s1113_s22 = sphi %s1163_s22, %s1358_s22   ;;  %s1109_s21 = sphi %s1161_s21, %s1357_s21   ;;  %s1105_s20 = sphi %s1159_s20, %s1356_s20   ;;  %s1101_s19 = sphi %s1157_s19, %s1355_s19   ;;  %s1097_s18 = sphi %s1155_s18, %s1354_s18  }
   0x5   : > { %p26_p0 = scmp.ge.s32.totalorder %s25_s25, 2  ;;  %p44_p1 = scmp.ne.s32.totalorder %s1101_s19, %s1097_s18 }
   0x6   : > { %p45_p2 = scmp.eq.s32.totalorder %s1121_s24, 0  ;;  %s37_s30 = sadd.s32 1, %s1101_s19 }
   0x7   : > { %s1361_s25 = smov (%p26_p0, %s25_s25), 0  ;;  %s1363_s26 = smov (!%p26_p0, %s28_s26), %s1117_s23 }
   0x8   : > { %p46_p3 = por %p45_p2, %p44_p1  ;;  %p30_p4 = scmp.ge.s32.totalorder %s1363_s26, 2 }
   0x9   : > { %s33_s27 = ssub.s32 %s1113_s22, %s1361_s25  ;;  %p962_p6 = scmp.ge.s32.totalorder %s1121_s24, 4 }
   0xa   : > { %s1365_s26 = smov (%p30_p4, %s1363_s26), 0 }
   0xb   : > { %s32_s28 = ssub.s32 %s1117_s23, %s1365_s26  ;;  %198 = sbr.rel (%p962_p6) target bundleno = 29 (0x1d), region = 28 }
   0xc   : > { %s34_s29 = sor.u32 %s33_s27, %s32_s28 }
   0xd   : > { %p35_p5 = scmp.eq.s32.totalorder %s34_s29, 0 }
   0xf   : > { %s1206_s6 = scalar_select %p35_p5, %s1101_s19, %s37_s30  }
  0x12   : > { %201 = sbr.rel (!%p46_p3) target bundleno = 29 (0x1d), region = 32  ;;  %s203_s7 = sand.u32 (%p46_p3), 1, %s1101_s19  }
  0x13   : > { %s986_s8 = sshll.u32 (%p46_p3), %s1113_s22, 4  ;;  %s963_s9 = sshll.u32 (%p46_p3), %s203_s7, 6 }
  0x14   : > { %s966_s10 = sshll.u32 (%p46_p3), %s1117_s23, 5  ;;  %s205_s16 = scalar_lea.vmem (%p46_p3), [#allocation2], %s963_s9 }
  0x15   : > { %s209_s11 = sadd.s32 (%p46_p3), %s986_s8, %s966_s10 }
  0x16   : > { %s967_s12 = sshll.u32 (%p46_p3), %s209_s11, 3 }
  0x17   : > { %s211_s15 = scalar_lea.vmem (%p46_p3), %s1348_s0, %s967_s12 }
  0x18   : > { %v253_v0 = vld [vmem:[%s211_s15] sm:$0xff] (%p46_p3)  ;;  %v255_v1 = vld [vmem:[%s211_s15 + $0x8] sm:$0xff] (%p46_p3) }
  0x19   : > { %v257_v2 = vld [vmem:[%s211_s15 + $0x20] sm:$0xff]  ;;  %254 = vst [vmem:[%s205_s16] sm:$0xff] %v253_v0  ;;  %256 = vst [vmem:[%s205_s16 + $0x8] sm:$0xff] %v255_v1  ;;  %v259_v3 = vld [vmem:[%s211_s15 + $0x28] sm:$0xff] }
  0x1a   : > { %258 = vst [vmem:[%s205_s16 + $0x10] sm:$0xff] %v257_v2  ;;  %v261_v4 = vld [vmem:[%s211_s15 + $0x40] sm:$0xff]  ;;  %v263_v5 = vld [vmem:[%s211_s15 + $0x48] sm:$0xff]  ;;  %260 = vst [vmem:[%s205_s16 + $0x18] sm:$0xff] %v259_v3 }
  0x1b   : > { %262 = vst [vmem:[%s205_s16 + $0x20] sm:$0xff] %v261_v4  ;;  %264 = vst [vmem:[%s205_s16 + $0x28] sm:$0xff] %v263_v5  ;;  %v265_v6 = vld [vmem:[%s211_s15 + $0x60] sm:$0xff]  ;;  %v267_v7 = vld [vmem:[%s211_s15 + $0x68] sm:$0xff] }
  0x1c   : > { %266 = vst [vmem:[%s205_s16 + $0x30] sm:$0xff] %v265_v6  ;;  %268 = vst [vmem:[%s205_s16 + $0x38] sm:$0xff] %v267_v7 }
  0x1d PF: > { %p968_p7 = scmp.ge.s32.totalorder %s1121_s24, 1  ;;  %p273_p8 = scmp.lt.s32.totalorder %s1121_s24, 5 }
  0x1f   : > { %p274_p9 = pnand %p968_p7, %p273_p8 }
  0x20   : > { %v558_v8 = vld [vmem:[%s1349_s1] sm:$0x3] (!%p274_p9)  ;;  %vm695_vm0 = vcmask (!%p274_p9), 1041408   ;;  %s280_s28 = sand.u32 (!%p274_p9), 1, %s1097_s18   ;;  %v362_v9 = vlaneseq (!%p274_p9)  ;;  %v1123_v11 = vmov (!%p274_p9), 1983009808  }
  0x21   : > { %277 = sbr.rel (%p274_p9) target bundleno = 423 (0x1a7), region = 70  ;;  %1000 = vmatprep.subr.msk.bf16.mxu0 (!%p274_p9), %vm695_vm0, %v558_v8  ;;  %v697_v10 = vsel (!%p274_p9), %vm695_vm0, %v558_v8, 0  ;;  %s969_s29 = sshll.u32 (!%p274_p9), %s280_s28, 6  ;;  %v360_v12 = vunpack.c.l.s4 (!%p274_p9), %v1123_v11  ;;  %vm624_vm1 = vcmask (!%p274_p9), 1041409   ;;  %vm627_vm2 = vcmask (!%p274_p9), 1042434  }
  0x22   : > { %995 = vmatpush3.bf16.msra.mxu0 (!%p274_p9), %v697_v10  ;;  %v363_v13 = vshrl.u32 (!%p274_p9), %v362_v9, 7  ;;  %s282_s30 = scalar_lea.vmem (!%p274_p9), [#allocation2], %s969_s29  ;;  %vm630_vm3 = vcmask (!%p274_p9), 1043459   ;;  %vm633_vm4 = vcmask (!%p274_p9), 1044484   ;;  %vm636_vm5 = vcmask (!%p274_p9), 1045509   ;;  %s970_s18 = sshll.u32 (!%p274_p9), %s1105_s20, 2 }
  0x23   : > { %v342_v14 = vld [vmem:[%s282_s30] sm:$0xff] (!%p274_p9)  ;;  %v343_v15 = vld [vmem:[%s282_s30 + $0x8] sm:$0xff] (!%p274_p9)  ;;  %v344_v16 = vld [vmem:[%s282_s30 + $0x10] sm:$0xff] (!%p274_p9)  ;;  %v361_v17 = vunpack.c.0.s8 (!%p274_p9), %v360_v12  ;;  %vm639_vm6 = vcmask (!%p274_p9), 1046534   ;;  %vm642_vm7 = vcmask (!%p274_p9), 1047559   ;;  %vm688_vm8 = vcmask (!%p274_p9), 31744  }
  0x24   : > { %v345_v18 = vld [vmem:[%s282_s30 + $0x18] sm:$0xff] (!%p274_p9)  ;;  %v358_v19 = vcombine.high (!%p274_p9), %v342_v14, %v342_v14  ;;  %v375_v20 = vcombine.high (!%p274_p9), %v343_v15, %v343_v15  ;;  %v392_v21 = vcombine.high (!%p274_p9), %v344_v16, %v344_v16  ;;  %v1221_v22 = vld [vmem:[%s282_s30 + $0x20] sm:$0xff] (!%p274_p9)  ;;  %v1223_v23 = vld [vmem:[%s282_s30 + $0x28] sm:$0xff] (!%p274_p9)  ;;  %p322_p10 = scmp.lt.s32.totalorder (!%p274_p9), %s1109_s21, 1  ;;  %p324_p11 = scmp.lt.s32.totalorder (!%p274_p9), %s970_s18, 7  ;;  %vm778_vm9 = vcmask (!%p274_p9), 125952  }
  0x25   : > { %v1225_v24 = vsub.s32 (!%p274_p9), %v361_v17, %v363_v13  ;;  %v409_v25 = vcombine.high (!%p274_p9), %v345_v18, %v345_v18  ;;  %v1227_v26 = vld [vmem:[%s282_s30 + $0x30] sm:$0xff] (!%p274_p9)  ;;  %v1229_v27 = vld [vmem:[%s282_s30 + $0x38] sm:$0xff] (!%p274_p9)  ;;  %v426_v28 = vcombine.high (!%p274_p9), %v1221_v22, %v1221_v22  ;;  %v443_v29 = vcombine.high (!%p274_p9), %v1223_v23, %v1223_v23  ;;  %s1124_s15 = smov (!%p274_p9), 112  }
  0x26   : > { %v460_v30 = vcombine.high (!%p274_p9), %v1227_v26, %v1227_v26  ;;  %v477_v31 = vcombine.high (!%p274_p9), %v1229_v27, %v1229_v27  ;;  %vm811_vm10 = vcmask (!%p274_p9), 27648  }
  0x27   : > { %v365_v32 = vrot.slane (!%p274_p9), %v342_v14, %v1225_v24  ;;  %v372_v33 = vrot.slane (!%p274_p9), %v358_v19, %v1225_v24  ;;  %v382_v34 = vrot.slane (!%p274_p9), %v343_v15, %v1225_v24  ;;  %v389_v35 = vrot.slane (!%p274_p9), %v375_v20, %v1225_v24 }
  0x28   : > { %v399_v36 = vrot.slane %v344_v16, %v1225_v24  ;;  %v406_v37 = vrot.slane %v392_v21, %v1225_v24  ;;  %v416_v38 = vrot.slane %v345_v18, %v1225_v24  ;;  %v423_v39 = vrot.slane %v409_v25, %v1225_v24  ;;  %s1367_s21 = smov (!%p322_p10, %s1109_s21), 1  ;;  %s1369_s18 = smov (!%p324_p11, %s970_s18), 7 }
  0x29   : > { %v373_v40 = vcombine.high %v365_v32, %v365_v32  ;;  %v374_v41 = vcombine.high %v372_v33, %v372_v33  ;;  %v390_v42 = vcombine.high %v382_v34, %v382_v34  ;;  %v391_v43 = vcombine.high %v389_v35, %v389_v35  ;;  %s971_s7 = sshll.u32 %s1367_s21, 3 }
  0x2a   : > { %v407_v44 = vcombine.high %v399_v36, %v399_v36  ;;  %v408_v45 = vcombine.high %v406_v37, %v406_v37  ;;  %v424_v46 = vcombine.high %v416_v38, %v416_v38  ;;  %v425_v47 = vcombine.high %v423_v39, %v423_v39  ;;  %s1307_s10 = sadd.s32 %s971_s7, %s1369_s18 }
  0x2b   : > { %v526_v48 = vpack.c.bf16 %v365_v32, %v365_v32  ;;  %v527_v49 = vpack.c.bf16 %v373_v40, %v373_v40  ;;  %v528_v50 = vpack.c.bf16 %v372_v33, %v372_v33  ;;  %v529_v51 = vpack.c.bf16 %v374_v41, %v374_v41  ;;  %s972_s20 = sshll.u32 %s1307_s10, 2 }
  0x2c   : > { %v530_v52 = vpack.c.bf16 %v382_v34, %v382_v34  ;;  %v531_v53 = vpack.c.bf16 %v390_v42, %v390_v42  ;;  %v532_v54 = vpack.c.bf16 %v389_v35, %v389_v35  ;;  %v533_v55 = vpack.c.bf16 %v391_v43, %v391_v43  ;;  %s339_s14 = scalar_lea.vmem %s1353_s5, %s972_s20  ;;  %s329_s27 = scalar_lea.vmem %s1352_s4, %s972_s20 }
  0x2d   : > { %v534_v56 = vpack.c.bf16 %v399_v36, %v399_v36  ;;  %v535_v57 = vpack.c.bf16 %v407_v44, %v407_v44  ;;  %v536_v58 = vpack.c.bf16 %v406_v37, %v406_v37  ;;  %v537_v59 = vpack.c.bf16 %v408_v45, %v408_v45 }
  0x2e   : > { %v538_v60 = vpack.c.bf16 %v416_v38, %v416_v38  ;;  %v539_v61 = vpack.c.bf16 %v424_v46, %v424_v46  ;;  %v540_v62 = vpack.c.bf16 %v423_v39, %v423_v39  ;;  %v541_v63 = vpack.c.bf16 %v425_v47, %v425_v47 }
  0x2f   : > { %v591_v0 = vunpack.c.l.b16 %v526_v48  ;;  %v592_v1 = vunpack.c.l.b16 %v527_v49  ;;  %v593_v2 = vunpack.c.l.b16 %v528_v50  ;;  %v594_v3 = vunpack.c.l.b16 %v529_v51 }
  0x30   : > { %v595_v4 = vunpack.c.l.b16 %v530_v52  ;;  %v596_v5 = vunpack.c.l.b16 %v531_v53  ;;  %v597_v6 = vunpack.c.l.b16 %v532_v54  ;;  %v598_v7 = vunpack.c.l.b16 %v533_v55 }
  0x31   : > { %v599_v8 = vunpack.c.l.b16 %v534_v56  ;;  %v600_v9 = vunpack.c.l.b16 %v535_v57  ;;  %v601_v10 = vunpack.c.l.b16 %v536_v58  ;;  %v602_v11 = vunpack.c.l.b16 %v537_v59 }
  0x32   : > { %v603_v12 = vunpack.c.l.b16 %v538_v60  ;;  %v604_v13 = vunpack.c.l.b16 %v539_v61  ;;  %v605_v14 = vunpack.c.l.b16 %v540_v62  ;;  %v606_v15 = vunpack.c.l.b16 %v541_v63 }
  0x33   : > { %v623_v16 = vrot.slane %v592_v1, 7  ;;  %v626_v17 = vrot.slane %v593_v2, 6  ;;  %v629_v18 = vrot.slane %v594_v3, 5  ;;  %v632_v19 = vrot.slane %v595_v4, 4 }
  0x34   : > { %v635_v20 = vrot.slane %v596_v5, 3  ;;  %v638_v21 = vrot.slane %v597_v6, 2  ;;  %v641_v25 = vrot.slane %v598_v7, 1  ;;  %v644_v32 = vrot.slane %v600_v9, 7 }
  0x35   : > { %v625_v33 = vsel %vm624_vm1, %v623_v16, %v591_v0  ;;  %v646_v34 = vrot.slane %v601_v10, 6  ;;  %v648_v35 = vrot.slane %v602_v11, 5  ;;  %v650_v36 = vrot.slane %v603_v12, 4 }
  0x36   : > { %v628_v37 = vsel %vm627_vm2, %v626_v17, %v625_v33  ;;  %v645_v38 = vsel %vm624_vm1, %v644_v32, %v599_v8  ;;  %v652_v39 = vrot.slane %v604_v13, 3  ;;  %v654_v40 = vrot.slane %v605_v14, 2 }
  0x37   : > { %v631_v41 = vsel %vm630_vm3, %v629_v18, %v628_v37  ;;  %v647_v42 = vsel %vm627_vm2, %v646_v34, %v645_v38  ;;  %v656_v43 = vrot.slane %v606_v15, 1  ;;  %v433_v44 = vrot.slane %v1221_v22, %v1225_v24 }
  0x38   : > { %v634_v45 = vsel %vm633_vm4, %v632_v19, %v631_v41  ;;  %v649_v46 = vsel %vm630_vm3, %v648_v35, %v647_v42  ;;  %v440_v47 = vrot.slane %v426_v28, %v1225_v24  ;;  %v450_v48 = vrot.slane %v1223_v23, %v1225_v24 }
  0x39   : > { %v637_v49 = vsel %vm636_vm5, %v635_v20, %v634_v45  ;;  %v651_v50 = vsel %vm633_vm4, %v650_v36, %v649_v46  ;;  %v457_v51 = vrot.slane %v443_v29, %v1225_v24  ;;  %v441_v54 = vcombine.high %v433_v44, %v433_v44 }
  0x3a   : > { %v640_v52 = vsel %vm639_vm6, %v638_v21, %v637_v49  ;;  %v653_v53 = vsel %vm636_vm5, %v652_v39, %v651_v50  ;;  %v442_v22 = vcombine.high %v440_v47, %v440_v47  ;;  %v458_v56 = vcombine.high %v450_v48, %v450_v48 }
  0x3b   : > { %v643_v28 = vsel %vm642_vm7, %v641_v25, %v640_v52  ;;  %v655_v55 = vsel %vm639_vm6, %v654_v40, %v653_v53  ;;  %v467_v57 = vrot.slane %v1227_v26, %v1225_v24  ;;  %v474_v23 = vrot.slane %v460_v30, %v1225_v24 }
  0x3c   : > { %v657_v58 = vsel %vm642_vm7, %v656_v43, %v655_v55  ;;  %v484_v29 = vrot.slane %v1229_v27, %v1225_v24  ;;  %v491_v59 = vrot.slane %v477_v31, %v1225_v24  ;;  %v459_v61 = vcombine.high %v457_v51, %v457_v51 }
  0x3d   : > { %v686_v60 = vpack.c.b16 %v657_v58, %v643_v28  ;;  %v475_v62 = vcombine.high %v467_v57, %v467_v57  ;;  %v476_v63 = vcombine.high %v474_v23, %v474_v23  ;;  %v543_v1 = vpack.c.bf16 %v441_v54, %v441_v54 }
  0x3e   : > { %v492_v0 = vcombine.high %v484_v29, %v484_v29  ;;  %v544_v2 = vpack.c.bf16 %v440_v47, %v440_v47  ;;  %v493_v3 = vcombine.high %v491_v59, %v491_v59  ;;  %v545_v26 = vpack.c.bf16 %v442_v22, %v442_v22 }
  0x3f   : > { %996 = vmatprep.mubr.msk.bf16.mxu0 %vm688_vm8, %v686_v60  ;;  %v546_v30 = vpack.c.bf16 %v450_v48, %v450_v48  ;;  %v547_v4 = vpack.c.bf16 %v458_v56, %v458_v56  ;;  %v542_v5 = vpack.c.bf16 %v433_v44, %v433_v44  ;;  %v548_v6 = vpack.c.bf16 %v457_v51, %v457_v51 }
  0x40   : > { %v551_v7 = vpack.c.bf16 %v475_v62, %v475_v62  ;;  %v552_v8 = vpack.c.bf16 %v474_v23, %v474_v23  ;;  %v549_v9 = vpack.c.bf16 %v459_v61, %v459_v61  ;;  %v550_v27 = vpack.c.bf16 %v467_v57, %v467_v57 }
  0x41   : > { %v553_v24 = vpack.c.bf16 %v476_v63, %v476_v63  ;;  %v554_v31 = vpack.c.bf16 %v484_v29, %v484_v29  ;;  %v555_v10 = vpack.c.bf16 %v492_v0, %v492_v0  ;;  %v556_v11 = vpack.c.bf16 %v491_v59, %v491_v59  ;;  %v978_v63 = vld [vmem:[%s1350_s2] ss:$0 sm:$0xff] }
  0x42   : > { %v608_v12 = vunpack.c.l.b16 %v543_v1  ;;  %v609_v13 = vunpack.c.l.b16 %v544_v2  ;;  %v557_v14 = vpack.c.bf16 %v493_v3, %v493_v3  ;;  %v610_v15 = vunpack.c.l.b16 %v545_v26  ;;  %v979_v1 = vld [vmem:[%s1351_s3] ss:$0 sm:$0xff] }
  0x43   : > { %v611_v16 = vunpack.c.l.b16 %v546_v30  ;;  %v612_v17 = vunpack.c.l.b16 %v547_v4  ;;  %v607_v18 = vunpack.c.l.b16 %v542_v5  ;;  %v613_v19 = vunpack.c.l.b16 %v548_v6 }
  0x44   : > { %v616_v20 = vunpack.c.l.b16 %v551_v7  ;;  %v617_v21 = vunpack.c.l.b16 %v552_v8  ;;  %v614_v25 = vunpack.c.l.b16 %v549_v9  ;;  %v615_v32 = vunpack.c.l.b16 %v550_v27 }
  0x45   : > { %v618_v33 = vunpack.c.l.b16 %v553_v24  ;;  %v619_v34 = vunpack.c.l.b16 %v554_v31  ;;  %v620_v35 = vunpack.c.l.b16 %v555_v10  ;;  %v658_v36 = vrot.slane %v608_v12, 7 }
  0x46   : > { %v660_v37 = vrot.slane %v609_v13, 6  ;;  %v662_v38 = vrot.slane %v610_v15, 5  ;;  %v621_v39 = vunpack.c.l.b16 %v556_v11  ;;  %v622_v40 = vunpack.c.l.b16 %v557_v14 }
  0x47   : > { %v664_v41 = vrot.slane %v611_v16, 4  ;;  %v666_v42 = vrot.slane %v612_v17, 3  ;;  %v659_v43 = vsel %vm624_vm1, %v658_v36, %v607_v18  ;;  %v672_v44 = vrot.slane %v616_v20, 7 }
  0x48   : > { %v674_v45 = vrot.slane %v617_v21, 6  ;;  %v676_v46 = vrot.slane %v618_v33, 5  ;;  %v661_v47 = vsel %vm627_vm2, %v660_v37, %v659_v43  ;;  %v668_v48 = vrot.slane %v613_v19, 2 }
  0x49   : > { %v678_v49 = vrot.slane %v619_v34, 4  ;;  %v663_v50 = vsel %vm630_vm3, %v662_v38, %v661_v47  ;;  %v670_v51 = vrot.slane %v614_v25, 1  ;;  %v673_v52 = vsel %vm624_vm1, %v672_v44, %v615_v32 }
  0x4a   : > { %v680_v53 = vrot.slane %v620_v35, 3  ;;  %v665_v54 = vsel %vm633_vm4, %v664_v41, %v663_v50  ;;  %v675_v22 = vsel %vm627_vm2, %v674_v45, %v673_v52  ;;  %v682_v28 = vrot.slane %v621_v39, 2 }
  0x4b   : > { %v667_v55 = vsel %vm636_vm5, %v666_v42, %v665_v54  ;;  %v677_v56 = vsel %vm630_vm3, %v676_v46, %v675_v22  ;;  %v684_v57 = vrot.slane %v622_v40, 1 }
  0x4c   : > { %v669_v58 = vsel %vm639_vm6, %v668_v48, %v667_v55  ;;  %v679_v23 = vsel %vm633_vm4, %v678_v49, %v677_v56 }
  0x4d   : > { %v671_v29 = vsel %vm642_vm7, %v670_v51, %v669_v58  ;;  %v681_v59 = vsel %vm636_vm5, %v680_v53, %v679_v23 }
  0x4e   : > { %v683_v60 = vsel %vm639_vm6, %v682_v28, %v681_v59 }
  0x4f   : > { %v685_v61 = vsel %vm642_vm7, %v684_v57, %v683_v60 }
  0x50   : > { %v687_v62 = vpack.c.b16 %v685_v61, %v671_v29 }
  0x52   : > { %997 = vmatmul.mubr.msk.bf16.vlgmr.msra.gmra.mrb[0].mxu0 %vm688_vm8, %v687_v62 }
 0x125   : > { %v998_v0 = vpop.f32.mrb[0].mxu0 }
 0x126   : > { %v757_v2 = vmul.f32 %v998_v0, %v978_v63  ;;  %v733_v3 = vpop.f32.mrb[1].mxu0 }
 0x127   : > { %v755_v26 = vmul.f32 %v978_v63, %v733_v3  ;;  %v999_v30 = vpop.f32.mrb[2].mxu0 }
 0x128   : > { %v768_v4 = vadd.f32 %v979_v1, %v757_v2  ;;  %v758_v5 = vmul.f32 %v999_v30, %v978_v63  ;;  %v736_v6 = vpop.f32.mrb[3].mxu0 }
 0x129   : > { %v766_v7 = vadd.f32 %v979_v1, %v755_v26  ;;  %v756_v8 = vmul.f32 %v978_v63, %v736_v6 }
 0x12a   : > { %v776_v9 = vpack.c.bf16 %v768_v4, %v768_v4  ;;  %v769_v27 = vadd.f32 %v979_v1, %v758_v5  ;;  %v772_v24 = vmax.f32 %v768_v4, 0.0 }
 0x12b   : > { %v774_v31 = vpack.c.bf16 %v766_v7, %v766_v7  ;;  %v767_v10 = vadd.f32 %v979_v1, %v756_v8  ;;  %v770_v11 = vmax.f32 %v766_v7, 0.0 }
 0x12c   : > { %v777_v12 = vpack.c.bf16 %v769_v27, %v769_v27  ;;  %v989_v13 = vpack.c.bf16 %v772_v24, %v772_v24  ;;  %v773_v14 = vmax.f32 %v769_v27, 0.0  ;;  %781 = vst.msk [vmem:[%s339_s14 + $0x8] sm:$0xf] %vm778_vm9, %v776_v9 }
 0x12d   : > { %v775_v15 = vpack.c.bf16 %v767_v10, %v767_v10  ;;  %v987_v16 = vpack.c.bf16 %v770_v11, %v770_v11  ;;  %v771_v17 = vmax.f32 %v767_v10, 0.0  ;;  %779 = vst.msk [vmem:[%s339_s14] sm:$0xf] %vm778_vm9, %v774_v31 }
 0x12e   : > { %803 = vrot.lane.b32.xlu1 %v989_v13, %s1124_s15  ;;  %782 = vst.msk [vmem:[%s339_s14 + $0xc] sm:$0xf] %vm778_vm9, %v777_v12  ;;  %v990_v18 = vpack.c.bf16 %v773_v14, %v773_v14 }
 0x12f   : > { %799 = vrot.lane.b32.xlu0 %v987_v16, %s1124_s15  ;;  %780 = vst.msk [vmem:[%s339_s14 + $0x4] sm:$0xf] %vm778_vm9, %v775_v15  ;;  %v988_v19 = vpack.c.bf16 %v771_v17, %v771_v17 }
 0x132   : > { %805 = vrot.lane.b32.xlu1 %v990_v18, %s1124_s15 }
 0x133   : > { %801 = vrot.lane.b32.xlu0 %v988_v19, %s1124_s15 }
 0x1a0   : > { %v804_v20 = vpop.permute.xlu1 %803 }
 0x1a1   : > { %814 = vst.msk [vmem:[%s329_s27 + $0x8] sm:$0xf] %vm811_vm10, %v804_v20  ;;  %v800_v21 = vpop.permute.xlu0 %799 }
 0x1a2   : > { %812 = vst.msk [vmem:[%s329_s27] sm:$0xf] %vm811_vm10, %v800_v21 }
 0x1a4   : > { %v806_v25 = vpop.permute.xlu1 %805 }
 0x1a5   : > { %815 = vst.msk [vmem:[%s329_s27 + $0xc] sm:$0xf] %vm811_vm10, %v806_v25  ;;  %v802_v32 = vpop.permute.xlu0 %801 }
 0x1a6   : > { %813 = vst.msk [vmem:[%s329_s27 + $0x4] sm:$0xf] %vm811_vm10, %v802_v32 }
 0x1a7 PF: > { %s16_s24 = sadd.s32 1, %s1121_s24   ;;  %s1354_s18 = smov %s1101_s19 }
 0x1a8   : > { %p13_p12 = scmp.ge.s32.totalorder %s16_s24, 6   ;;  %s1355_s19 = smov %s1206_s6 }
 0x1a9   : > { %s1356_s20 = smov %s1113_s22  ;;  %s1357_s21 = smov %s1117_s23 }
 0x1aa   : > { %s1358_s22 = smov %s1361_s25  ;;  %s1359_s23 = smov %s1365_s26 }
 0x1ab   :  { %15 = sbr.rel (!%p13_p12) target bundleno = 4 (0x4), region = 121 }

// kernel: bottleneck_forward.3
= control target key start
LH: loop header
LB: loop body
LE: loop exit
PB: predicated region body
PF: predicated region fallthrough
CT: control target
= control target key end

     0   :  { %s2434_s0 = inlined_call_operand.vmem [shape: bf16[2,8,8,4], index: 0, kind: input, shape index: {}, may-alias: {0,1,2}]   ;;  %s2435_s1 = inlined_call_operand.vmem [shape: bf16[2,8,8,4], index: 1, kind: input, shape index: {}, may-alias: {0,1,2}]   ;;  %s2436_s2 = inlined_call_operand.vmem [shape: bf16[2,8,8,4], index: 2, kind: input, shape index: {}, may-alias: {0,1,2}]   ;;  %s2437_s3 = inlined_call_operand.vmem [shape: bf16[3,3,4,4], index: 3, kind: input, shape index: {}]   ;;  %s2438_s4 = inlined_call_operand.vmem [shape: f32[1,4], index: 4, kind: input, shape index: {}]   ;;  %s2439_s5 = inlined_call_operand.vmem [shape: f32[1,4], index: 5, kind: input, shape index: {}]   ;;  %s2440_s6 = inlined_call_operand.vmem [shape: bf16[4,16], index: 6, kind: input, shape index: {}]   ;;  %s2441_s7 = inlined_call_operand.vmem [shape: f32[1,16], index: 7, kind: input, shape index: {}]   ;;  %s2442_s8 = inlined_call_operand.vmem [shape: f32[1,16], index: 8, kind: input, shape index: {}]   ;;  %s2443_s9 = inlined_call_operand.vmem [shape: bf16[2,8,8,16], index: 9, kind: input, shape index: {}]   ;;  %s2444_s10 = inlined_call_operand.hbm [shape: f32[2,8,8,16], index: 10, kind: output, shape index: {}]  }
   0x1   :  { %2450 = sst [smem:[#allocation11_spill]] %s2434_s0 }
   0x2   :  { %2451 = sst [smem:[#allocation12_spill]] %s2436_s2 }
   0x3   :  { %15 = vsyncpa [#allocation3], 0 }
   0x4   :  { %17 = vsyncpa [#allocation3 + $0x1], 0  ;;  %s2038_s13 = smov 0   ;;  %s2040_s14 = smov 0  }
   0x5   :  { %s2042_s15 = smov 0   ;;  %s2044_s16 = smov 0  }
   0x6   :  { %s2046_s17 = smov 0   ;;  %s2048_s18 = smov 0  }
   0x7   :  { %s2050_s19 = smov 0   ;;  %s2052_s20 = smov 0  }
   0x8 LB: > { %2452 = sst [smem:[#allocation5_spill]] %s1958_s15  ;;  %s1569_s21 = sadd.s32 4294967295, %s1978_s20   ;;  %s1978_s20 = sphi %s2052_s20, %s23_s20   ;;  %s1974_s19 = sphi %s2050_s19, %s2472_s19   ;;  %s1970_s18 = sphi %s2048_s18, %s2471_s18   ;;  %s1966_s17 = sphi %s2046_s17, %s2470_s17   ;;  %s1962_s16 = sphi %s2044_s16, %s2469_s16   ;;  %s1958_s15 = sphi %s2042_s15, %s2468_s15   ;;  %s1954_s14 = sphi %s2040_s14, %s2474_s14   ;;  %s1950_s13 = sphi %s2038_s13, %s2473_s13  }
   0x9   : > { %2453 = sst [smem:[#allocation6_spill]] %s1970_s18  ;;  %s1570_s22 = sadd.s32 4294967294, %s1978_s20  }
   0xa   : > { %2454 = sst [smem:[#allocation7_spill]] %s1974_s19  ;;  %s32_s23 = sadd.s32 1, %s1970_s18 }
   0xb   : > { %p33_p0 = scmp.ge.s32.totalorder %s32_s23, 2  ;;  %s35_s24 = sadd.s32 1, %s1974_s19 }
   0xc   : > { %p308_p1 = scmp.ne.s32.totalorder %s1958_s15, %s1954_s14  ;;  %p309_p2 = scmp.eq.s32.totalorder %s1569_s21, 3 }
   0xd   : > { %s2476_s23 = smov (%p33_p0, %s32_s23), 0  ;;  %s2478_s24 = smov (!%p33_p0, %s35_s24), %s1974_s19 }
   0xe   : > { %2455 = sst [smem:[#allocation8_spill]] %s2476_s23  ;;  %s294_s25 = ssub.s32 %s1970_s18, %s2476_s23 }
   0xf   : > { %p2089_p3 = por %p309_p2, %p308_p1  ;;  %p37_p4 = scmp.ge.s32.totalorder %s2478_s24, 2 }
  0x10   : > { %p314_p5 = scmp.ne.s32.totalorder %s1954_s14, %s1950_s13  ;;  %p315_p6 = scmp.eq.s32.totalorder %s1570_s22, 3 }
  0x11   : > { %p1579_p7 = scmp.ge.s32.totalorder %s1978_s20, 1  ;;  %s2480_s24 = smov (%p37_p4, %s2478_s24), 0 }
  0x12   : > { %2457 = sst [smem:[#allocation9_spill]] %s2480_s24  ;;  %p2098_p8 = por %p315_p6, %p314_p5 }
  0x13   : > { %p415_p9 = scmp.lt.s32.totalorder %s1978_s20, 5  ;;  %s293_s28 = ssub.s32 %s1974_s19, %s2480_s24 }
  0x14   : > { %s298_s29 = sadd.s32 1, %s1958_s15  ;;  %s295_s30 = sor.u32 %s294_s25, %s293_s28 }
  0x15   : > { %p416_p10 = pnand %p1579_p7, %p415_p9  ;;  %p296_p11 = scmp.eq.s32.totalorder %s295_s30, 0 }
  0x16   : > { %vm700_vm0 = vcmask (!%p416_p10), 1041408   ;;  %v1627_v0 = vld [vmem:[%s2437_s3 + $0x8] sm:$0x3] (!%p416_p10)  ;;  %s2113_s22 = sshll.u32 (!%p416_p10), %s1962_s16, 2  ;;  %p491_p12 = scmp.lt.s32.totalorder (!%p416_p10), %s1966_s17, 1  ;;  %vm652_vm1 = vcmask (!%p416_p10), 1040384  }
  0x17   : > { %s2107_s11 = scalar_select %p296_p11, %s1958_s15, %s298_s29  }
  0x18   : > { %419 = sbr.rel (%p416_p10) target bundleno = 570 (0x23a), region = 60  ;;  %1798 = vmatprep.subr.msk.bf16.mxu0 (!%p416_p10), %vm700_vm0, %v1627_v0  ;;  %v974_v1 = vsel (!%p416_p10), %vm700_vm0, %v1627_v0, 0  ;;  %p493_p13 = scmp.lt.s32.totalorder (!%p416_p10), %s2113_s22, 7  ;;  %v1632_v2 = vld [vmem:[%s2437_s3 + $0xa] sm:$0x3] (!%p416_p10)  ;;  %vm693_vm3 = vcmask (!%p416_p10), 31744  }
  0x19   : > { %2459 = sst [smem:[#allocation10_spill]] %s2107_s11  ;;  %s517_s25 = sadd.s32 (!%p416_p10), 4, %s2113_s22  ;;  %1727 = vmatpush3.bf16.msra.mxu0 (!%p416_p10), %v974_v1  ;;  %v1608_v3 = vld [vmem:[%s2437_s3 + $0x2] sm:$0x3] (!%p416_p10)  ;;  %v2134_v5 = vld [vmem:[%s2437_s3] sm:$0x3] (!%p416_p10) }
  0x1a   : > { %1799 = vmatprep.subr.msk.bf16.mxu0 (!%p416_p10), %vm700_vm0, %v1632_v2  ;;  %1794 = vmatprep.subr.msk.bf16.mxu1 (!%p416_p10), %vm700_vm0, %v1608_v3  ;;  %v702_v4 = vsel (!%p416_p10), %vm700_vm0, %v1608_v3, 0  ;;  %p2138_p0 = scmp.lt.s32.totalorder (!%p416_p10), %s517_s25, 7  ;;  %p564_p1 = scmp.lt.s32.totalorder (!%p416_p10), %s1962_s16, 1  ;;  %vm653_vm2 = vsmask.f32 (!%p416_p10), 256  ;;  %vm679_vm4 = vcmask (!%p416_p10), 1043456  }
  0x1b   : > { %1703 = vmatpush3.bf16.msra.mxu1 (!%p416_p10), %v702_v4  ;;  %s2461_s0 = sld [smem:[#allocation11_spill]] (!%p416_p10)  ;;  %v1042_v8 = vsel (!%p416_p10), %vm700_vm0, %v1632_v2, 0  ;;  %vm680_vm5 = vsmask.f32 (!%p416_p10), 3328  ;;  %v1637_v21 = vld [vmem:[%s2437_s3 + $0xc] sm:$0x3] (!%p416_p10)  ;;  %vm2197_vm6 = vmand (!%p416_p10), %vm652_vm1, %vm653_vm2 }
  0x1c   : > { %1795 = vmatprep.subr.msk.bf16.mxu1 (!%p416_p10), %vm700_vm0, %v2134_v5  ;;  %vm2210_vm7 = vmand (!%p416_p10), %vm679_vm4, %vm680_vm5  ;;  %s2466_s2 = sld [smem:[#allocation12_spill]] (!%p416_p10)  ;;  %p546_p6 = scmp.gt.s32.totalorder (!%p416_p10), %s1962_s16, 0  ;;  %v1106_v50 = vsel (!%p416_p10), %vm700_vm0, %v1637_v21, 0  ;;  %v1641_v51 = vld [vmem:[%s2437_s3 + $0xe] sm:$0x3] (!%p416_p10)  ;;  %vm1412_vm8 = vcmask (!%p416_p10), 130048  }
  0x1d   : > { %v1168_v0 = vsel (!%p416_p10), %vm700_vm0, %v1641_v51, 0  ;;  %v1645_v3 = vld [vmem:[%s2437_s3 + $0x10] sm:$0x3] (!%p416_p10) }
  0x1f   : > { %s492_s28 = scalar_select %p491_p12, %s1966_s17, 1 }
  0x20   : > { %s494_s24 = scalar_select %p493_p13, %s2113_s22, 7 }
  0x21   : > { %s2136_s18 = sshll.u32 %s492_s28, 3  ;;  %s2482_s25 = smov (!%p2138_p0, %s517_s25), 7 }
  0x22   : > { %s496_s30 = sadd.s32 %s2136_s18, %s494_s24  ;;  %s2484_s25 = smov (!%p2138_p0, %s2482_s25), 7 }
  0x23   : > { %s2146_s12 = sshll.u32 %s496_s30, 2  ;;  %s2190_s19 = sadd.s32 %s2136_s18, %s2484_s25 }
  0x24   : > { %s498_s28 = scalar_lea.vmem %s2461_s0, %s2146_s12  ;;  %s2204_s25 = sadd.s32 4294967295, %s2113_s22 }
  0x25   : > { %v2154_v6 = vld [vmem:[%s498_s28] sm:$0xf]  ;;  %v2156_v7 = vld [vmem:[%s498_s28 + $0x4] sm:$0xf]  ;;  %s565_s24 = scalar_select %p564_p1, 1, 0 }
  0x26   : > { %v2159_v9 = vld [vmem:[%s498_s28 + $0x8] sm:$0xf]  ;;  %v2163_v10 = vcombine.low %v2154_v6, %v2154_v6  ;;  %v1604_v11 = vcombine.low %v2156_v7, %v2156_v7  ;;  %v1628_v12 = vcombine.low %v2154_v6, %v2156_v7  ;;  %v2169_v13 = vld [vmem:[%s498_s28 + $0xc] sm:$0xf]  ;;  %s1598_s23 = sshll.u32 %s2190_s19, 2  ;;  %p502_p4 = scmp.gt.s32.totalorder %s2204_s25, 0 }
  0x27   : > { %v1605_v14 = vcombine.low %v2159_v9, %v2159_v9  ;;  %v2177_v15 = vcombine.low %v2169_v13, %v2169_v13  ;;  %v1629_v16 = vcombine.low %v2159_v9, %v2169_v13  ;;  %s2181_s21 = scvt.s32.f32 %s565_s24  ;;  %p1586_p5 = scmp.lt.s32.totalorder %s2204_s25, 7  ;;  %v1610_v1 = vcombine.low %v2156_v7, %v2159_v9 }
  0x28   : > { %v612_v17 = vshrl.u32 %v2163_v10, 16  ;;  %v615_v18 = vshll.u32 %v2163_v10, 16  ;;  %v619_v19 = vshrl.u32 %v1604_v11, 16  ;;  %v622_v20 = vshll.u32 %v1604_v11, 16  ;;  %1728 = vmatprep.mubr.msk.bf16.mxu0 %vm693_vm3, %v1628_v12 }
  0x29   : > { %v626_v22 = vshrl.u32 %v1605_v14, 16  ;;  %v629_v23 = vshll.u32 %v1605_v14, 16  ;;  %v633_v24 = vshrl.u32 %v2177_v15, 16  ;;  %v636_v25 = vshll.u32 %v2177_v15, 16  ;;  %1729 = vmatmul.mubr.msk.bf16.vlgmr.msra.gmra.mrb[0].mxu0 %vm693_vm3, %v1629_v16  ;;  %s569_s28 = sshrl.u32 %s2181_s21, 16  ;;  %p568_p2 = scmp.ne.f32.partialorder %s2181_s21, %s2181_s21 }
  0x2a   : > { %v621_v26 = vrot.slane %v619_v19, 7  ;;  %v663_v28 = vrot.slane %v615_v18, 1  ;;  %v665_v29 = vrot.slane %v622_v20, 1  ;;  %1733 = vmatpush3.bf16.msra.mxu0 %v1042_v8  ;;  %s570_s24 = sand.u32 1, %s569_s28  ;;  %v614_v8 = vrot.slane %v612_v17, 7 }
  0x2b   : > { %v628_v30 = vrot.slane %v626_v22, 7  ;;  %v669_v31 = vrot.slane %v636_v25, 1  ;;  %v667_v32 = vrot.slane %v629_v23, 1  ;;  %1800 = vmatprep.subr.msk.bf16.mxu0 %vm700_vm0, %v1637_v21  ;;  %s571_s29 = sadd.s32 32767, %s570_s24  ;;  %s527_s24 = scalar_lea.vmem %s2466_s2, %s1598_s23  ;;  %v635_v54 = vrot.slane %v633_v24, 7 }
  0x2c   : > { %v624_v34 = vor.u32 %v622_v20, %v621_v26  ;;  %v664_v35 = vor.u32 %v663_v28, %v612_v17  ;;  %v666_v36 = vor.u32 %v665_v29, %v619_v19  ;;  %s572_s30 = sadd.s32 %s571_s29, %s2181_s21  ;;  %v545_v49 = vld [vmem:[%s527_s24] sm:$0xf]  ;;  %v770_v12 = vsel %vm700_vm0, %v2134_v5, 0  ;;  %v1617_v17 = vld [vmem:[%s2437_s3 + $0x4] sm:$0x3] }
  0x2d   : > { %v631_v37 = vor.u32 %v629_v23, %v628_v30  ;;  %v668_v38 = vor.u32 %v667_v32, %v626_v22  ;;  %v670_v39 = vor.u32 %v669_v31, %v633_v24  ;;  %s573_s0 = sand.u32 4294901760, %s572_s30  ;;  %v638_v56 = vor.u32 %v636_v25, %v635_v54  ;;  %v1622_v30 = vld [vmem:[%s2437_s3 + $0x6] sm:$0x3] }
  0x2e   : > { %v2223_v40 = vsel %vm2197_vm6, 0, %v624_v34  ;;  %v2228_v41 = vsel %vm2210_vm7, %v664_v35, 0  ;;  %v2232_v42 = vsel %vm2210_vm7, %v666_v36, 0  ;;  %s2486_s0 = smov (%p568_p2, %s573_s0), 2143289344  ;;  %v617_v14 = vor.u32 %v615_v18, %v614_v8  ;;  %v1315_v35 = vld [vmem:[%s2440_s6] sm:$0x3] }
  0x2f   : > { %v2239_v43 = vsel %vm2210_vm7, %v668_v38, 0  ;;  %v2243_v44 = vsel %vm2210_vm7, %v670_v39, 0  ;;  %v1633_v45 = vcombine.low %v2228_v41, %v2232_v42  ;;  %v2249_v46 = vsel %vm2197_vm6, 0, %v631_v37  ;;  %s503_s23 = scalar_select %p502_p4, %s2204_s25, 0  ;;  %v1654_v8 = vld [vmem:[%s2442_s8] ss:$0 sm:$0xff] }
  0x30   : > { %v1634_v47 = vcombine.low %v2239_v43, %v2243_v44  ;;  %s576_s29 = sshrl.u32 %s2486_s0, 16  ;;  %v2263_v48 = vcombine.low %v2223_v40, %v2249_v46  ;;  %v2281_v61 = vsel %vm2197_vm6, 0, %v638_v56  ;;  %v656_v21 = vsel %vm2197_vm6, 0, %v617_v14 }
  0x31   : > { %1734 = vmatprep.mubr.msk.bf16.mxu0 %vm693_vm3, %v1633_v45  ;;  %s577_s30 = sshll.u32 %s576_s29, 16  ;;  %s2488_s23 = smov (!%p1586_p5, %s503_s23), 7  ;;  %v1232_v22 = vsel %vm700_vm0, %v1645_v3, 0  ;;  %v1619_v23 = vcombine.low %v2232_v42, %v2239_v43  ;;  %v840_v29 = vsel %vm700_vm0, %v1617_v17, 0  ;;  %v1623_v32 = vcombine.low %v656_v21, %v2223_v40  ;;  %v1649_v42 = vld [vmem:[%s2438_s4] ss:$0 sm:$0xff] }
  0x32   : > { %s578_s21 = sor.u32 %s577_s30, %s576_s29  ;;  %s509_s16 = sadd.s32 %s2488_s23, %s2136_s18  ;;  %v908_v33 = vsel %vm700_vm0, %v1622_v30, 0  ;;  %v1624_v34 = vcombine.low %v2249_v46, %v2281_v61  ;;  %v1323_v36 = vsel %vm700_vm0, %v1315_v35, 0  ;;  %v1650_v46 = vld [vmem:[%s2439_s5] ss:$0 sm:$0xff] }
  0x33   : > { %v579_v52 = vstv %s578_s21  ;;  %s547_s0 = scalar_select %p546_p6, 1, 0 }
  0x34   : > { %v581_v53 = vmul.bf16 %v579_v52, %v545_v49  ;;  %s1592_s29 = sshll.u32 %s509_s16, 2 }
  0x35   : > { %1735 = vmatmul.mubr.msk.bf16.vlgmr.msra.gmra.mrb[0].mxu0 %vm693_vm3, %v1634_v47  ;;  %s548_s24 = scvt.s32.f32 %s547_s0  ;;  %s511_s11 = scalar_lea.vmem %s2435_s1, %s1592_s29 }
  0x36   : > { %1739 = vmatpush3.bf16.msra.mxu0 %v1106_v50  ;;  %1740 = vmatprep.mubr.msk.bf16.mxu0 %vm693_vm3, %v2263_v48  ;;  %v1607_v55 = vcombine.low %v581_v53, %v581_v53  ;;  %v544_v2 = vld [vmem:[%s511_s11] sm:$0xf]  ;;  %s540_s0 = scalar_lea.vmem %s2443_s9, %s2146_s12  ;;  %s487_s11 = sand.u32 1, %s1954_s14  }
  0x37   : > { %1801 = vmatprep.subr.msk.bf16.mxu0 %vm700_vm0, %v1641_v51  ;;  %s551_s30 = sshrl.u32 %s548_s24, 16  ;;  %p550_p7 = scmp.ne.f32.partialorder %s548_s24, %s548_s24 }
  0x38   : > { %v640_v57 = vshrl.u32 %v1607_v55, 16  ;;  %v643_v58 = vshll.u32 %v1607_v55, 16  ;;  %s552_s25 = sand.u32 1, %s551_s30  ;;  %s1657_s30 = sshll.u32 %s1966_s17, 3 }
  0x39   : > { %s553_s21 = sadd.s32 32767, %s552_s25  ;;  %s1580_s25 = sshll.u32 %s487_s11, 5 }
  0x3a   : > { %v642_v59 = vrot.slane %v640_v57, 7  ;;  %s554_s19 = sadd.s32 %s553_s21, %s548_s24  ;;  %v671_v5 = vrot.slane %v643_v58, 1  ;;  %s1430_s12 = sadd.s32 %s1657_s30, %s2113_s22 }
  0x3b   : > { %s555_s15 = sand.u32 4294901760, %s554_s19  ;;  %s1658_s17 = sshll.u32 %s1430_s12, 7 }
  0x3c   : > { %v645_v60 = vor.u32 %v643_v58, %v642_v59  ;;  %s2490_s15 = smov (%p550_p7, %s555_s15), 2143289344  ;;  %v672_v26 = vor.u32 %v671_v5, %v640_v57  ;;  %s489_s21 = scalar_lea.vmem [#allocation2], %s1580_s25 }
  0x3d   : > { %s558_s18 = sshrl.u32 %s2490_s15, 16  ;;  %s1433_s19 = sshll.u32 %s489_s21, 4  ;;  %s2375_s19 = int_to_ptr.vmem [resolvable:$true] %s1433_s19 }
  0x3e   : > { %v660_v62 = vsel %vm2197_vm6, 0, %v645_v60  ;;  %s559_s2 = sshll.u32 %s558_s18, 16  ;;  %v687_v27 = vsel %vm2210_vm7, %v672_v26, 0  ;;  %s1884_s23 = scalar_lea.vmem %s2375_s19, 512 }
  0x3f   : > { %v1638_v63 = vcombine.low %v2281_v61, %v660_v62  ;;  %s560_s16 = sor.u32 %s559_s2, %s558_s18  ;;  %v1646_v31 = vcombine.low %v2243_v44, %v687_v27  ;;  %s2373_s18 = scalar_lea.hbm %s2444_s10, %s1658_s17 }
  0x40   : > { %v561_v4 = vstv %s560_s16  ;;  %s2382_s2 = scalar_lea.sflag [#allocation3], %s487_s11  ;;  %p1885_p9 = scmp.ne.s32.totalorder %s2375_s19, %s1884_s23 }
  0x41   : > { %1741 = vmatmul.mubr.msk.bf16.vlgmr.msra.gmra.mrb[0].mxu0 %vm693_vm3, %v1638_v63  ;;  %v563_v11 = vmul.bf16 %v561_v4, %v544_v2  ;;  %v1671_v2 = vld [vmem:[%s540_s0 + $0x8] sm:$0xff]  }
  0x42   : > { %1745 = vmatpush3.bf16.msra.mxu0 %v1168_v0  ;;  %1746 = vmatprep.mubr.msk.bf16.mxu0 %vm693_vm3, %v1610_v1  ;;  %p1886_p10 = pnand %p1885_p9, %p2089_p3 }
  0x43   : > { %1802 = vmatprep.subr.msk.bf16.mxu0 %vm700_vm0, %v1645_v3  ;;  %v1602_v7 = vcombine.low %v563_v11, %v563_v11  ;;  %v1609_v9 = vcombine.low %v563_v11, %v2154_v6  ;;  %v1642_v6 = vcombine.low %v2169_v13, %v581_v53  ;;  %v1664_v3 = vld [vmem:[%s540_s0] sm:$0xff]   ;;  %s1980_s0 = smov [#allocation2]  }
  0x44   : > { %v1665_v14 = vunpack.c.l.bf16 %v1664_v3  ;;  %p1887_p11 = pneg %p1886_p10  ;;  %s1888_s16 = sshll.u32 %s1980_s0, 4  ;;  %s1889_s16 = int_to_ptr.vmem [resolvable:$false] %s1888_s16 }
  0x45   : > { %v605_v15 = vshrl.u32 %v1602_v7, 16  ;;  %v608_v16 = vshll.u32 %v1602_v7, 16  ;;  %1704 = vmatprep.mubr.msk.bf16.mxu1 %vm693_vm3, %v1609_v9  ;;  %v1669_v7 = vunpack.c.l.bf16 %v1671_v2  ;;  %s1890_s15 = scalar_lea.vmem %s1889_s16, 1024  ;;  %p1891_p12 = scmp.lt.s32.totalorder %s2375_s19, %s1889_s16 }
  0x46   : > { %1705 = vmatmul.mubr.msk.bf16.vlgmr.msra.gmra.mrb[0].mxu1 %vm693_vm3, %v1610_v1  ;;  %v1653_v1 = vld [vmem:[%s2441_s7] ss:$0 sm:$0xff]  ;;  %p1892_p13 = scmp.lt.s32.totalorder %s1890_s15, %s1884_s23 }
  0x47   : > { %v607_v19 = vrot.slane %v605_v15, 7  ;;  %v661_v20 = vrot.slane %v608_v16, 1  ;;  %1709 = vmatpush3.bf16.msra.mxu1 %v770_v12 }
  0x48   : > { %1796 = vmatprep.subr.msk.bf16.mxu1 %vm700_vm0, %v1617_v17  ;;  %p1893_p0 = por %p1892_p13, %p1891_p12 }
  0x49   : > { %v610_v10 = vor.u32 %v608_v16, %v607_v19  ;;  %v662_v18 = vor.u32 %v661_v20, %v605_v15  ;;  %v1670_v19 = vunpack.c.h.bf16 %v1671_v2 }
  0x4a   : > { %p1894_p1 = pnand %p1893_p0, %p1887_p11 }
  0x4b   : > { %v655_v24 = vsel %vm2197_vm6, 0, %v610_v10  ;;  %v682_v13 = vsel %vm2210_vm7, %v662_v18, 0  ;;  %v1666_v10 = vunpack.c.h.bf16 %v1664_v3 }
  0x4c   : > { %v1613_v25 = vcombine.low %v655_v24, %v656_v21  ;;  %v1618_v28 = vcombine.low %v682_v13, %v2228_v41 }
  0x4d   : > { %1747 = vmatmul.mubr.msk.bf16.vlgmr.msra.gmra.mrb[0].mxu0 %vm693_vm3, %v1642_v6 }
  0x4e   : > { %1751 = vmatpush3.bf16.msra.mxu0 %v1232_v22  ;;  %1752 = vmatprep.mubr.msk.bf16.mxu0 %vm693_vm3, %v1619_v23 }
  0x4f   : > { %1710 = vmatprep.mubr.msk.bf16.mxu1 %vm693_vm3, %v1613_v25 }
  0x52   : > { %1711 = vmatmul.mubr.msk.bf16.vlgmr.msra.gmra.mrb[0].mxu1 %vm693_vm3, %v2263_v48 }
  0x53   : > { %1715 = vmatpush3.bf16.msra.mxu1 %v840_v29  ;;  %1716 = vmatprep.mubr.msk.bf16.mxu1 %vm693_vm3, %v1618_v28 }
  0x54   : > { %1797 = vmatprep.subr.msk.bf16.mxu1 %vm700_vm0, %v1622_v30 }
  0x59   : > { %1753 = vmatmul.mubr.msk.bf16.vlgmr.msra.gmra.mrb[0].mxu0 %vm693_vm3, %v1646_v31 }
  0x5e   : > { %1717 = vmatmul.mubr.msk.bf16.vlgmr.msra.gmra.mrb[0].mxu1 %vm693_vm3, %v1619_v23 }
  0x5f   : > { %1721 = vmatpush3.bf16.msra.mxu1 %v908_v33  ;;  %1722 = vmatprep.mubr.msk.bf16.mxu1 %vm693_vm3, %v1623_v32 }
  0x60   : > { %1803 = vmatprep.subr.msk.bf16.mxu1 %vm700_vm0, %v1315_v35 }
  0x6a   : > { %1723 = vmatmul.mubr.msk.bf16.vlgmr.msra.gmra.mrb[0].mxu1 %vm693_vm3, %v1624_v34 }
  0x6b   : > { %1757 = vmatpush3.bf16.msra.mxu1 %v1323_v36 }
 0x12c   : > { %v1754_v37 = vpop.f32.mrb[0].mxu0 }
 0x12d   : > { %v1268_v38 = vpop.f32.mrb[1].mxu0 }
 0x12e   : > { %v1755_v39 = vpop.f32.mrb[2].mxu0 }
 0x12f   : > { %v1271_v40 = vpop.f32.mrb[3].mxu0 }
 0x13d   : > { %v1724_v41 = vpop.f32.mrb[0].mxu1 }
 0x13e   : > { %v944_v43 = vpop.f32.mrb[1].mxu1  ;;  %v1762_v44 = vadd.f32 %v1754_v37, %v1724_v41 }
 0x13f   : > { %v1725_v45 = vpop.f32.mrb[2].mxu1  ;;  %v1763_v47 = vadd.f32 %v1268_v38, %v944_v43 }
 0x140   : > { %v1296_v48 = vmul.f32 %v1762_v44, %v1649_v42  ;;  %v947_v49 = vpop.f32.mrb[3].mxu1  ;;  %v1764_v50 = vadd.f32 %v1755_v39, %v1725_v45 }
 0x141   : > { %v1294_v51 = vmul.f32 %v1763_v47, %v1649_v42  ;;  %v1765_v52 = vadd.f32 %v1271_v40, %v947_v49 }
 0x142   : > { %v1307_v53 = vadd.f32 %v1650_v46, %v1296_v48  ;;  %v1297_v54 = vmul.f32 %v1764_v50, %v1649_v42 }
 0x143   : > { %v1305_v55 = vadd.f32 %v1650_v46, %v1294_v51  ;;  %v1295_v56 = vmul.f32 %v1765_v52, %v1649_v42 }
 0x144   : > { %v1308_v57 = vadd.f32 %v1650_v46, %v1297_v54  ;;  %v1311_v59 = vmax.f32 %v1307_v53, 0.0 }
 0x145   : > { %v1306_v58 = vadd.f32 %v1650_v46, %v1295_v56  ;;  %v1309_v61 = vmax.f32 %v1305_v55, 0.0 }
 0x146   : > { %v1312_v60 = vmax.f32 %v1308_v57, 0.0 }
 0x147   : > { %v1310_v62 = vmax.f32 %v1306_v58, 0.0 }
 0x148   : > { %v1314_v63 = vpack.c.bf16 %v1312_v60, %v1311_v59 }
 0x149   : > { %v1313_v0 = vpack.c.bf16 %v1310_v62, %v1309_v61 }
 0x14b   : > { %1758 = vmatprep.mubr.msk.bf16.mxu1 %vm693_vm3, %v1313_v0 }
 0x14c   : > { %1759 = vmatmul.mubr.msk.bf16.vlgmr.msra.gmra.mrb[4].mxu1 %vm693_vm3, %v1314_v63 }
 0x21f   : > { %v1760_v4 = vpop.f32.mrb[4].mxu1 }
 0x220   : > { %v1383_v11 = vmul.f32 %v1760_v4, %v1653_v1  ;;  %v1359_v9 = vpop.f32.mrb[5].mxu1 }
 0x221   : > { %v1381_v12 = vmul.f32 %v1653_v1, %v1359_v9  ;;  %v1761_v15 = vpop.f32.mrb[6].mxu1 }
 0x222   : > { %v1394_v16 = vadd.f32 %v1654_v8, %v1383_v11  ;;  %v1384_v17 = vmul.f32 %v1761_v15, %v1653_v1  ;;  %v1362_v20 = vpop.f32.mrb[7].mxu1 }
 0x223   : > { %v1392_v6 = vadd.f32 %v1654_v8, %v1381_v12  ;;  %v1382_v5 = vmul.f32 %v1653_v1, %v1362_v20 }
 0x224   : > { %v1406_v18 = vadd.f32 %v1669_v7, %v1394_v16  ;;  %v1395_v21 = vadd.f32 %v1654_v8, %v1384_v17 }
 0x225   : > { %v1404_v22 = vadd.f32 %v1665_v14, %v1392_v6  ;;  %v1393_v23 = vadd.f32 %v1654_v8, %v1382_v5 }
 0x226   : > { %v1410_v24 = vmax.f32 %v1406_v18, 0.0  ;;  %v1407_v25 = vadd.f32 %v1670_v19, %v1395_v21 }
 0x227   : > { %v1408_v13 = vmax.f32 %v1404_v22, 0.0  ;;  %v1405_v26 = vadd.f32 %v1666_v10, %v1393_v23 }
 0x228   : > { %1415 = vst.msk [vmem:[%s489_s21 + $0x10] sm:$0xff] %vm1412_vm8, %v1410_v24  ;;  %v1411_v28 = vmax.f32 %v1407_v25, 0.0 }
 0x229   : > { %1413 = vst.msk [vmem:[%s489_s21] sm:$0xff] %vm1412_vm8, %v1408_v13  ;;  %v1409_v29 = vmax.f32 %v1405_v26, 0.0 }
 0x22a   : > { %1416 = vst.msk [vmem:[%s489_s21 + $0x18] sm:$0xff] %vm1412_vm8, %v1411_v28 }
 0x22b   : > { %1414 = vst.msk [vmem:[%s489_s21 + $0x8] sm:$0xff] %vm1412_vm8, %v1409_v29 }
 0x22c   : > { %1897 = shalt.err (!%p1894_p1)
}
 0x22d   : > { %s1898_s11 = scalar_lea.hbm %s2373_s18, 512  ;;  %s1902_s30 = scalar_lea.hbm %s2444_s10, 2048 }
 0x22e   : > { %p1899_p2 = scmp.ne.s32.totalorder %s2373_s18, %s1898_s11  ;;  %p1903_p6 = scmp.lt.u32.totalorder %s2373_s18, %s2444_s10 }
 0x22f   : > { %p1904_p7 = scmp.lt.u32.totalorder %s1902_s30, %s1898_s11  ;;  %p1906_p10 = scmp.lt.u32.totalorder %s1898_s11, %s2373_s18 }
 0x230   : > { %p1900_p4 = pnand %p1899_p2, %p2089_p3 }
 0x231   : > { %p1905_p9 = por %p1904_p7, %p1903_p6 }
 0x232   : > { %p1901_p5 = pneg %p1900_p4 }
 0x233   : > { %p1907_p11 = por %p1906_p10, %p1905_p9 }
 0x235   : > { %p1908_p12 = pnand %p1907_p11, %p1901_p5 }
 0x237   : > { %1911 = shalt.err (!%p1908_p12)
}
 0x238   : > { %s1981_s17 = smov 128   ;;  %s1982_s21 = smov 8  }
 0x239   : > { %1804 = dma.vmem_to_hbm [thread:$0]  (%p2089_p3), %s2375_s19, 512, %s2373_s18, %s2382_s2, %s1981_s17, %s1981_s17, %s1982_s21  }
 0x23a PF: > { %p1810_p13 = scmp.ge.s32.totalorder %s1978_s20, 2  ;;  %s1448_s22 = sand.u32 1, %s1950_s13  }
 0x23b   : > { %s1449_s28 = scalar_lea.sflag [#allocation3], %s1448_s22 }
 0x23c   : > { %p1807_p0 = pnand %p1810_p13, %p2098_p8 }
 0x23e   : > { %1945 = dma.done.wait (!%p1807_p0), %s1449_s28, 512  }
 0x23f   : > { %1947 = vsyncadd (!%p1807_p0), %s1449_s28, 4294966784  ;;  %s23_s20 = sadd.s32 1, %s1978_s20   ;;  %s2467_s23 = sld [smem:[#allocation5_spill]] }
 0x240   : > { %p20_p1 = scmp.ge.s32.totalorder %s23_s20, 6   ;;  %s2468_s15 = sld [smem:[#allocation10_spill]] }
 0x241   : > { %s2469_s16 = sld [smem:[#allocation6_spill]]  ;;  %s2470_s17 = sld [smem:[#allocation7_spill]] }
 0x242   : > { %s2471_s18 = sld [smem:[#allocation8_spill]]  ;;  %s2472_s19 = sld [smem:[#allocation9_spill]] }
 0x243   : > { %s2473_s13 = smov %s1954_s14  ;;  %22 = sbr.rel (!%p20_p1) target bundleno = 8 (0x8), region = 112 }
 0x245   : > { %s2474_s14 = smov %s2467_s23 }
 0x24a   :  { %1454 = vsyncpa [#allocation3], 1 }
 0x24b   :  { %1456 = vsyncpa [#allocation3 + $0x1], 1 }

</bundles_post_ra>
